<compile_context>
chip_gen: v5e
topology: v5e:2x2
jax: 0.10.0
libtpu: 0.0.40
codegen_flags: <defaults>
</compile_context>

<pallas_src>
import math
from functools import partial

import jax
import jax.numpy as jnp
from jax.experimental import pallas as pl
from jax.experimental.pallas import tpu as pltpu


def mha_kernel(xfull_ref, xq_ref,
               wq_ref, wk_ref, wv_ref, bq_ref, bk_ref, bv_ref, wproj_ref, bproj_ref,
               o_ref,
               k_cache, v_cache, m_s, l_s, acc_s,
               *, n_heads, q_tile, kv_tile, compute_dtype):
    """One (batch, q-tile) grid step of multi-head self-attention."""
    _, T, D = xfull_ref.shape
    H = n_heads
    hd = D // H
    n_kv = T // kv_tile
    scale = 1.0 / math.sqrt(hd)
    f32 = jnp.float32

    def split_heads(y):
        # (rows, D) -> (H, rows, hd): lane-dim slices + leading-axis stack (head axis is a
        # cheap "major" dim; all subsequent matmuls are batched over it).
        return jnp.stack([y[:, h * hd:(h + 1) * hd] for h in range(H)], axis=0)

    qt = pl.program_id(1)

    # ---- project K / V once per batch element, cache head-major in VMEM scratch ----
    @pl.when(qt == 0)
    def _():
        xf = xfull_ref[0].astype(compute_dtype)                                  # (T, D)
        k = jnp.dot(xf, wk_ref[...], preferred_element_type=f32) + bk_ref[...]
        v = jnp.dot(xf, wv_ref[...], preferred_element_type=f32) + bv_ref[...]
        k_cache[...] = split_heads(k.astype(compute_dtype))                      # (H, T, hd)
        v_cache[...] = split_heads(v.astype(compute_dtype))

    # ---- Q projection for this query tile ----
    xq = xq_ref[0].astype(compute_dtype)                                         # (TQ, D)
    q = jnp.dot(xq, wq_ref[...], preferred_element_type=f32) + bq_ref[...]
    q_h = split_heads((q * scale).astype(compute_dtype))                         # (H, TQ, hd)

    # ---- flash-style online softmax over KV chunks (never builds (T, T) scores) ----
    m_s[...] = jnp.full_like(m_s, -jnp.inf)
    l_s[...] = jnp.zeros_like(l_s)
    acc_s[...] = jnp.zeros_like(acc_s)

    def kv_step(i, carry):
        start = pl.multiple_of(i * kv_tile, kv_tile)
        kb = k_cache[:, pl.ds(start, kv_tile), :]                                # (H, TKV, hd)
        vb = v_cache[:, pl.ds(start, kv_tile), :]
        s = jnp.einsum('hqd,hkd->hqk', q_h, kb,
                       preferred_element_type=f32)                               # (H, TQ, TKV)
        m_new = jnp.maximum(m_s[...], jnp.max(s, axis=-1, keepdims=True))
        alpha = jnp.exp(m_s[...] - m_new)
        p = jnp.exp(s - m_new)
        l_s[...] = alpha * l_s[...] + jnp.sum(p, axis=-1, keepdims=True)
        acc_s[...] = alpha * acc_s[...] + jnp.einsum(
            'hqk,hkd->hqd', p.astype(compute_dtype), vb, preferred_element_type=f32)
        m_s[...] = m_new
        return carry

    jax.lax.fori_loop(0, n_kv, kv_step, 0)

    attn = acc_s[...] * pl.reciprocal(l_s[...], approx=True)                     # (H, TQ, hd) f32

    # ---- output projection: sum_h attn_h @ Wproj[h]  (== concat-heads then matmul) ----
    yh = jnp.einsum('hqd,hde->hqe', attn.astype(compute_dtype), wproj_ref[...],
                    preferred_element_type=f32)                                  # (H, TQ, D)
    y = jnp.sum(yh, axis=0) + bproj_ref[...]                                     # (TQ, D)
    o_ref[0] = y.astype(o_ref.dtype)


def multihead_attention(x, params, *, n_heads, q_tile=None, kv_tile=None,
                        compute_dtype=jnp.float32, buffered_weights=True):
    B, T, D = x.shape
    assert D % n_heads == 0
    hd = D // n_heads

    def pick_tile(t, candidates):
        for c in candidates:
            if t % c == 0:
                return c
        return t

    # Tile sizes should be tuned per TPU generation (smaller on v5e/v7x, larger on v6e).
    if q_tile is None:
        q_tile = pick_tile(T, (128, 64, 32, 16, 8))
    if kv_tile is None:
        kv_tile = pick_tile(T, (512, 256, 128, 64, 32, 16, 8))
    assert T % q_tile == 0 and T % kv_tile == 0
    assert (q_tile % 8 == 0) or (q_tile == T)
    assert (kv_tile % 8 == 0) or (kv_tile == T)
    n_qt = T // q_tile

    cd = compute_dtype
    # Weight matrices in compute dtype (bf16 halves weight DMA/VMEM); biases stay f32 and
    # are added to the f32 MXU accumulators. Wproj is pre-split per head on the host.
    wq = params["wq"].astype(cd)
    wk = params["wk"].astype(cd)
    wv = params["wv"].astype(cd)
    wproj_h = params["wproj"].reshape(n_heads, hd, D).astype(cd)
    bq = params["bq"].astype(jnp.float32)
    bk = params["bk"].astype(jnp.float32)
    bv = params["bv"].astype(jnp.float32)
    bproj = params["bproj"].astype(jnp.float32)
    weights = [wq, wk, wv, bq, bk, bv, wproj_h, bproj]

    def w_spec(arr):
        nd = arr.ndim
        imap = lambda b, q, _nd=nd: (0,) * _nd
        if buffered_weights:
            # Constant block index -> single buffer is enough; halves resident weight VMEM.
            return pl.BlockSpec(arr.shape, imap, pipeline_mode=pl.Buffered(1))
        return pl.BlockSpec(arr.shape, imap)

    in_specs = (
        [pl.BlockSpec((1, T, D), lambda b, q: (b, 0, 0)),        # full sequence (for K/V)
         pl.BlockSpec((1, q_tile, D), lambda b, q: (b, q, 0))]   # current query tile
        + [w_spec(w) for w in weights]
    )
    out_spec = pl.BlockSpec((1, q_tile, D), lambda b, q: (b, q, 0))

    scratch = [
        pltpu.VMEM((n_heads, T, hd), cd),            # K cache (head-major)
        pltpu.VMEM((n_heads, T, hd), cd),            # V cache (head-major)
        pltpu.VMEM((n_heads, q_tile, 1), jnp.float32),   # running max
        pltpu.VMEM((n_heads, q_tile, 1), jnp.float32),   # running denom
        pltpu.VMEM((n_heads, q_tile, hd), jnp.float32),  # output accumulator
    ]

    flops = int(B * (8 * T * D * D + 4 * T * T * D))
    bytes_accessed = int(4 * 2 * B * T * D
                         + sum(int(w.size) * w.dtype.itemsize for w in weights))
    transcendentals = int(B * n_heads * T * T)
    cost = pl.CostEstimate(flops=flops, transcendentals=transcendentals,
                           bytes_accessed=bytes_accessed)

    kern = partial(mha_kernel, n_heads=n_heads, q_tile=q_tile, kv_tile=kv_tile,
                   compute_dtype=cd)

    return pl.pallas_call(
        kern,
        out_shape=jax.ShapeDtypeStruct((B, T, D), x.dtype),
        grid_spec=pltpu.PrefetchScalarGridSpec(
            num_scalar_prefetch=0,
            grid=(B, n_qt),                         # b parallel, q-tiles sequential (KV cache carry)
            in_specs=in_specs,
            out_specs=out_spec,
            scratch_shapes=scratch),
        compiler_params=pltpu.CompilerParams(
            dimension_semantics=("parallel", "arbitrary"),
            vmem_limit_bytes=64 * 1024 * 1024),     # tune per generation (64 MiB fits v7x too)
        cost_estimate=cost,
    )(x, x, *weights)


def init_params(key, D):
    """Synthetic parameters. Kernel-side layout is (in, out), i.e. x @ W == x @ W_pt.T."""
    ks = jax.random.split(key, 8)
    s = 0.02
    n = jax.random.normal
    return {
        "wq": s * n(ks[0], (D, D), jnp.float32), "bq": s * n(ks[1], (1, D), jnp.float32),
        "wk": s * n(ks[2], (D, D), jnp.float32), "bk": s * n(ks[3], (1, D), jnp.float32),
        "wv": s * n(ks[4], (D, D), jnp.float32), "bv": s * n(ks[5], (1, D), jnp.float32),
        "wproj": s * n(ks[6], (D, D), jnp.float32), "bproj": s * n(ks[7], (1, D), jnp.float32),
    }


def reference(x, p, n_heads):
    """Pure-JAX replica of the PyTorch forward (eval mode, mask=None)."""
    B, T, D = x.shape
    hd = D // n_heads
    q = x @ p["wq"] + p["bq"][0]
    k = x @ p["wk"] + p["bk"][0]
    v = x @ p["wv"] + p["bv"][0]
    q = q.reshape(B, T, n_heads, hd).transpose(0, 2, 1, 3)
    k = k.reshape(B, T, n_heads, hd).transpose(0, 2, 1, 3)
    v = v.reshape(B, T, n_heads, hd).transpose(0, 2, 1, 3)
    attn = (q @ jnp.swapaxes(k, -2, -1)) * (1.0 / math.sqrt(hd))
    attn = jax.nn.softmax(attn, axis=-1)
    o = (attn @ v).transpose(0, 2, 1, 3).reshape(B, T, D)
    return o @ p["wproj"] + p["bproj"][0]


if __name__ == "__main__":
    B, T, D, H = 2, 16, 128, 4          # D multiple of 128 -> lane-dense stores
    key = jax.random.PRNGKey(0)
    kx, kp = jax.random.split(key)
    x = jax.random.normal(kx, (B, T, D), jnp.float32)
    params = init_params(kp, D)

    def run(compute_dtype):
        try:
            return multihead_attention(x, params, n_heads=H, q_tile=8, kv_tile=8,
                                       compute_dtype=compute_dtype,
                                       buffered_weights=True)
        except Exception:
            # pl.Buffered(1) pipeline_mode unsupported in this jax build ->
            # fall back to default double-buffered weight blocks.
            return multihead_attention(x, params, n_heads=H, q_tile=8, kv_tile=8,
                                       compute_dtype=compute_dtype,
                                       buffered_weights=False)

    ref = reference(x, params, H)

    out = jax.block_until_ready(run(jnp.float32))
    assert out.shape == (B, T, D)
    err = float(jnp.max(jnp.abs(out - ref)))
    assert jnp.allclose(out, ref, atol=2e-3, rtol=2e-3), f"f32 max abs diff {err}"

    out_bf16 = jax.block_until_ready(run(jnp.bfloat16))
    err16 = float(jnp.max(jnp.abs(out_bf16.astype(jnp.float32) - ref)))
    assert jnp.allclose(out_bf16.astype(jnp.float32), ref, atol=2e-2, rtol=2e-2), \
        f"bf16 max abs diff {err16}"

    print("KERNEL_OK")
</pallas_src>

<mosaic_0001>
module attributes {stable_mosaic.version = 11 : i64} {
  func.func @mha_kernel(%arg0: i32, %arg1: i32, %arg2: memref<1x16x128xf32, #tpu.memory_space<vmem>>, %arg3: memref<1x8x128xf32, #tpu.memory_space<vmem>>, %arg4: memref<128x128xf32, #tpu.memory_space<vmem>>, %arg5: memref<128x128xf32, #tpu.memory_space<vmem>>, %arg6: memref<128x128xf32, #tpu.memory_space<vmem>>, %arg7: memref<1x128xf32, #tpu.memory_space<vmem>>, %arg8: memref<1x128xf32, #tpu.memory_space<vmem>>, %arg9: memref<1x128xf32, #tpu.memory_space<vmem>>, %arg10: memref<4x32x128xf32, #tpu.memory_space<vmem>>, %arg11: memref<1x128xf32, #tpu.memory_space<vmem>>, %arg12: memref<1x8x128xf32, #tpu.memory_space<vmem>>, %arg13: memref<4x16x32xf32, #tpu.memory_space<vmem>>, %arg14: memref<4x16x32xf32, #tpu.memory_space<vmem>>, %arg15: memref<4x8x1xf32, #tpu.memory_space<vmem>>, %arg16: memref<4x8x1xf32, #tpu.memory_space<vmem>>, %arg17: memref<4x8x32xf32, #tpu.memory_space<vmem>>) attributes {dimension_semantics = [#tpu.dimension_semantics<parallel>, #tpu.dimension_semantics<arbitrary>], iteration_bounds = array<i64: 2, 2>, scalar_prefetch = 0 : i64, scratch_operands = 5 : i64, tpu.core_type = #tpu.core_type<tc>, window_params = [{transform_indices = @transform_0, window_bounds = array<i64: 1, 16, 128>}, {transform_indices = @transform_1, window_bounds = array<i64: 1, 8, 128>}, {pipeline_mode = #tpu.pipeline_mode<synchronous>, transform_indices = @transform_2, window_bounds = array<i64: 128, 128>}, {pipeline_mode = #tpu.pipeline_mode<synchronous>, transform_indices = @transform_3, window_bounds = array<i64: 128, 128>}, {pipeline_mode = #tpu.pipeline_mode<synchronous>, transform_indices = @transform_4, window_bounds = array<i64: 128, 128>}, {pipeline_mode = #tpu.pipeline_mode<synchronous>, transform_indices = @transform_5, window_bounds = array<i64: 1, 128>}, {pipeline_mode = #tpu.pipeline_mode<synchronous>, transform_indices = @transform_6, window_bounds = array<i64: 1, 128>}, {pipeline_mode = #tpu.pipeline_mode<synchronous>, transform_indices = @transform_7, window_bounds = array<i64: 1, 128>}, {pipeline_mode = #tpu.pipeline_mode<synchronous>, transform_indices = @transform_8, window_bounds = array<i64: 4, 32, 128>}, {pipeline_mode = #tpu.pipeline_mode<synchronous>, transform_indices = @transform_9, window_bounds = array<i64: 1, 128>}, {transform_indices = @transform_10, window_bounds = array<i64: 1, 8, 128>}]} {
    %c0_i32 = arith.constant 0 : i32
    %0 = arith.cmpi eq, %arg1, %c0_i32 : i32
    %1 = arith.extui %0 : i1 to i32
    %c0_i32_0 = arith.constant 0 : i32
    %2 = arith.cmpi ne, %1, %c0_i32_0 : i32
    scf.if %2 {
      %c0_38 = arith.constant 0 : index
      %c0_39 = arith.constant 0 : index
      %c0_40 = arith.constant 0 : index
      %42 = vector.load %arg2[%c0_38, %c0_39, %c0_40] : memref<1x16x128xf32, #tpu.memory_space<vmem>>, vector<1x16x128xf32>
      %43 = vector.shape_cast %42 : vector<1x16x128xf32> to vector<16x128xf32>
      %c0_41 = arith.constant 0 : index
      %c0_42 = arith.constant 0 : index
      %44 = vector.load %arg5[%c0_41, %c0_42] : memref<128x128xf32, #tpu.memory_space<vmem>>, vector<128x128xf32>
      %cst_43 = arith.constant dense<0.000000e+00> : vector<16x128xf32>
      %45 = tpu.matmul %43, %44, %cst_43 {dimension_numbers = #tpu.dot_dimension_numbers<[1], [0], [0], [1], [0, 0, 1, 1], [], []>} : vector<16x128xf32>, vector<128x128xf32>, vector<16x128xf32> -> vector<16x128xf32>
      %c0_44 = arith.constant 0 : index
      %c0_45 = arith.constant 0 : index
      %46 = vector.load %arg8[%c0_44, %c0_45] : memref<1x128xf32, #tpu.memory_space<vmem>>, vector<1x128xf32>
      %47 = vector.broadcast %46 : vector<1x128xf32> to vector<16x128xf32>
      %48 = arith.addf %45, %47 : vector<16x128xf32>
      %c0_46 = arith.constant 0 : index
      %c0_47 = arith.constant 0 : index
      %49 = vector.load %arg6[%c0_46, %c0_47] : memref<128x128xf32, #tpu.memory_space<vmem>>, vector<128x128xf32>
      %cst_48 = arith.constant dense<0.000000e+00> : vector<16x128xf32>
      %50 = tpu.matmul %43, %49, %cst_48 {dimension_numbers = #tpu.dot_dimension_numbers<[1], [0], [0], [1], [0, 0, 1, 1], [], []>} : vector<16x128xf32>, vector<128x128xf32>, vector<16x128xf32> -> vector<16x128xf32>
      %c0_49 = arith.constant 0 : index
      %c0_50 = arith.constant 0 : index
      %51 = vector.load %arg9[%c0_49, %c0_50] : memref<1x128xf32, #tpu.memory_space<vmem>>, vector<1x128xf32>
      %52 = vector.broadcast %51 : vector<1x128xf32> to vector<16x128xf32>
      %53 = arith.addf %50, %52 : vector<16x128xf32>
      %54 = vector.extract_strided_slice %48 {offsets = [0, 0], sizes = [16, 32], strides = [1, 1]} : vector<16x128xf32> to vector<16x32xf32>
      %55 = vector.extract_strided_slice %48 {offsets = [0, 32], sizes = [16, 32], strides = [1, 1]} : vector<16x128xf32> to vector<16x32xf32>
      %56 = vector.extract_strided_slice %48 {offsets = [0, 64], sizes = [16, 32], strides = [1, 1]} : vector<16x128xf32> to vector<16x32xf32>
      %57 = vector.extract_strided_slice %48 {offsets = [0, 96], sizes = [16, 32], strides = [1, 1]} : vector<16x128xf32> to vector<16x32xf32>
      %58 = vector.shape_cast %54 : vector<16x32xf32> to vector<1x16x32xf32>
      %59 = vector.shape_cast %55 : vector<16x32xf32> to vector<1x16x32xf32>
      %60 = vector.shape_cast %56 : vector<16x32xf32> to vector<1x16x32xf32>
      %61 = vector.shape_cast %57 : vector<16x32xf32> to vector<1x16x32xf32>
      %62 = tpu.concatenate %58, %59, %60, %61 in 0 : vector<1x16x32xf32>, vector<1x16x32xf32>, vector<1x16x32xf32>, vector<1x16x32xf32> -> vector<4x16x32xf32>
      %c0_51 = arith.constant 0 : index
      %c0_52 = arith.constant 0 : index
      %c0_53 = arith.constant 0 : index
      %63 = vector.load %arg13[%c0_51, %c0_52, %c0_53] : memref<4x16x32xf32, #tpu.memory_space<vmem>>, vector<4x16x32xf32>
      tpu.vector_store %arg13[%c0_51, %c0_52, %c0_53], %62 {strides = array<i32>} : memref<4x16x32xf32, #tpu.memory_space<vmem>>, vector<4x16x32xf32>,
      %64 = vector.extract_strided_slice %53 {offsets = [0, 0], sizes = [16, 32], strides = [1, 1]} : vector<16x128xf32> to vector<16x32xf32>
      %65 = vector.extract_strided_slice %53 {offsets = [0, 32], sizes = [16, 32], strides = [1, 1]} : vector<16x128xf32> to vector<16x32xf32>
      %66 = vector.extract_strided_slice %53 {offsets = [0, 64], sizes = [16, 32], strides = [1, 1]} : vector<16x128xf32> to vector<16x32xf32>
      %67 = vector.extract_strided_slice %53 {offsets = [0, 96], sizes = [16, 32], strides = [1, 1]} : vector<16x128xf32> to vector<16x32xf32>
      %68 = vector.shape_cast %64 : vector<16x32xf32> to vector<1x16x32xf32>
      %69 = vector.shape_cast %65 : vector<16x32xf32> to vector<1x16x32xf32>
      %70 = vector.shape_cast %66 : vector<16x32xf32> to vector<1x16x32xf32>
      %71 = vector.shape_cast %67 : vector<16x32xf32> to vector<1x16x32xf32>
      %72 = tpu.concatenate %68, %69, %70, %71 in 0 : vector<1x16x32xf32>, vector<1x16x32xf32>, vector<1x16x32xf32>, vector<1x16x32xf32> -> vector<4x16x32xf32>
      %c0_54 = arith.constant 0 : index
      %c0_55 = arith.constant 0 : index
      %c0_56 = arith.constant 0 : index
      %73 = vector.load %arg14[%c0_54, %c0_55, %c0_56] : memref<4x16x32xf32, #tpu.memory_space<vmem>>, vector<4x16x32xf32>
      tpu.vector_store %arg14[%c0_54, %c0_55, %c0_56], %72 {strides = array<i32>} : memref<4x16x32xf32, #tpu.memory_space<vmem>>, vector<4x16x32xf32>,
    } else {
    }
    %c0 = arith.constant 0 : index
    %c0_1 = arith.constant 0 : index
    %c0_2 = arith.constant 0 : index
    %3 = vector.load %arg3[%c0, %c0_1, %c0_2] : memref<1x8x128xf32, #tpu.memory_space<vmem>>, vector<1x8x128xf32>
    %4 = vector.shape_cast %3 : vector<1x8x128xf32> to vector<8x128xf32>
    %c0_3 = arith.constant 0 : index
    %c0_4 = arith.constant 0 : index
    %5 = vector.load %arg4[%c0_3, %c0_4] : memref<128x128xf32, #tpu.memory_space<vmem>>, vector<128x128xf32>
    %cst = arith.constant dense<0.000000e+00> : vector<8x128xf32>
    %6 = tpu.matmul %4, %5, %cst {dimension_numbers = #tpu.dot_dimension_numbers<[1], [0], [0], [1], [0, 0, 1, 1], [], []>} : vector<8x128xf32>, vector<128x128xf32>, vector<8x128xf32> -> vector<8x128xf32>
    %c0_5 = arith.constant 0 : index
    %c0_6 = arith.constant 0 : index
    %7 = vector.load %arg7[%c0_5, %c0_6] : memref<1x128xf32, #tpu.memory_space<vmem>>, vector<1x128xf32>
    %8 = vector.broadcast %7 : vector<1x128xf32> to vector<8x128xf32>
    %9 = arith.addf %6, %8 : vector<8x128xf32>
    %cst_7 = arith.constant 0.176776692 : f32
    %10 = vector.broadcast %cst_7 : f32 to vector<8x128xf32>
    %11 = arith.mulf %9, %10 : vector<8x128xf32>
    %12 = vector.extract_strided_slice %11 {offsets = [0, 0], sizes = [8, 32], strides = [1, 1]} : vector<8x128xf32> to vector<8x32xf32>
    %13 = vector.extract_strided_slice %11 {offsets = [0, 32], sizes = [8, 32], strides = [1, 1]} : vector<8x128xf32> to vector<8x32xf32>
    %14 = vector.extract_strided_slice %11 {offsets = [0, 64], sizes = [8, 32], strides = [1, 1]} : vector<8x128xf32> to vector<8x32xf32>
    %15 = vector.extract_strided_slice %11 {offsets = [0, 96], sizes = [8, 32], strides = [1, 1]} : vector<8x128xf32> to vector<8x32xf32>
    %16 = vector.shape_cast %12 : vector<8x32xf32> to vector<1x8x32xf32>
    %17 = vector.shape_cast %13 : vector<8x32xf32> to vector<1x8x32xf32>
    %18 = vector.shape_cast %14 : vector<8x32xf32> to vector<1x8x32xf32>
    %19 = vector.shape_cast %15 : vector<8x32xf32> to vector<1x8x32xf32>
    %20 = tpu.concatenate %16, %17, %18, %19 in 0 : vector<1x8x32xf32>, vector<1x8x32xf32>, vector<1x8x32xf32>, vector<1x8x32xf32> -> vector<4x8x32xf32>
    %cst_8 = arith.constant 0xFF800000 : f32
    %21 = vector.broadcast %cst_8 : f32 to vector<4x8x1xf32>
    %c0_9 = arith.constant 0 : index
    %c0_10 = arith.constant 0 : index
    %c0_11 = arith.constant 0 : index
    %22 = vector.load %arg15[%c0_9, %c0_10, %c0_11] : memref<4x8x1xf32, #tpu.memory_space<vmem>>, vector<4x8x1xf32>
    tpu.vector_store %arg15[%c0_9, %c0_10, %c0_11], %21 {strides = array<i32>} : memref<4x8x1xf32, #tpu.memory_space<vmem>>, vector<4x8x1xf32>,
    %cst_12 = arith.constant 0.000000e+00 : f32
    %23 = vector.broadcast %cst_12 : f32 to vector<4x8x1xf32>
    %c0_13 = arith.constant 0 : index
    %c0_14 = arith.constant 0 : index
    %c0_15 = arith.constant 0 : index
    %24 = vector.load %arg16[%c0_13, %c0_14, %c0_15] : memref<4x8x1xf32, #tpu.memory_space<vmem>>, vector<4x8x1xf32>
    tpu.vector_store %arg16[%c0_13, %c0_14, %c0_15], %23 {strides = array<i32>} : memref<4x8x1xf32, #tpu.memory_space<vmem>>, vector<4x8x1xf32>,
    %cst_16 = arith.constant 0.000000e+00 : f32
    %25 = vector.broadcast %cst_16 : f32 to vector<4x8x32xf32>
    %c0_17 = arith.constant 0 : index
    %c0_18 = arith.constant 0 : index
    %c0_19 = arith.constant 0 : index
    %26 = vector.load %arg17[%c0_17, %c0_18, %c0_19] : memref<4x8x32xf32, #tpu.memory_space<vmem>>, vector<4x8x32xf32>
    tpu.vector_store %arg17[%c0_17, %c0_18, %c0_19], %25 {strides = array<i32>} : memref<4x8x32xf32, #tpu.memory_space<vmem>>, vector<4x8x32xf32>,
    %c0_i32_20 = arith.constant 0 : i32
    %c2_i32 = arith.constant 2 : i32
    %27 = arith.addi %c0_i32_20, %c2_i32 : i32
    %c1_i32 = arith.constant 1 : i32
    scf.for %arg18 = %c0_i32_20 to %27 step %c1_i32  : i32 {
      %c8_i32 = arith.constant 8 : i32
      %42 = arith.muli %arg18, %c8_i32 : i32
      %43 = tpu.assume_multiple %42, 8 : i32
      %c0_38 = arith.constant 0 : index
      %44 = arith.index_cast %43 : i32 to index
      %c0_39 = arith.constant 0 : index
      %45 = vector.load %arg13[%c0_38, %44, %c0_39] : memref<4x16x32xf32, #tpu.memory_space<vmem>>, vector<4x8x32xf32>
      %c0_40 = arith.constant 0 : index
      %46 = arith.index_cast %43 : i32 to index
      %c0_41 = arith.constant 0 : index
      %47 = vector.load %arg14[%c0_40, %46, %c0_41] : memref<4x16x32xf32, #tpu.memory_space<vmem>>, vector<4x8x32xf32>
      "tpu.trace_start"() <{level = 10 : i32, message = "hqd,hkd->hqk"}> : () -> ()
      %cst_42 = arith.constant dense<0.000000e+00> : vector<4x8x8xf32>
      %48 = tpu.matmul %20, %45, %cst_42 {dimension_numbers = #tpu.dot_dimension_numbers<[2], [2], [1], [1], [0, 0, 0, 1, 1, 1], [0], [0]>} : vector<4x8x32xf32>, vector<4x8x32xf32>, vector<4x8x8xf32> -> vector<4x8x8xf32>
      "tpu.trace_stop"() : () -> ()
      %c0_43 = arith.constant 0 : index
      %c0_44 = arith.constant 0 : index
      %c0_45 = arith.constant 0 : index
      %49 = vector.load %arg15[%c0_43, %c0_44, %c0_45] : memref<4x8x1xf32, #tpu.memory_space<vmem>>, vector<4x8x1xf32>
      %cst_46 = arith.constant dense<0xFF800000> : vector<4x8xf32>
      %50 = vector.multi_reduction <maximumf>, %48, %cst_46 [2] : vector<4x8x8xf32> to vector<4x8xf32>
      %51 = vector.shape_cast %50 : vector<4x8xf32> to vector<4x8x1xf32>
      %52 = arith.maximumf %49, %51 : vector<4x8x1xf32>
      %c0_47 = arith.constant 0 : index
      %c0_48 = arith.constant 0 : index
      %c0_49 = arith.constant 0 : index
      %53 = vector.load %arg15[%c0_47, %c0_48, %c0_49] : memref<4x8x1xf32, #tpu.memory_space<vmem>>, vector<4x8x1xf32>
      %54 = arith.subf %53, %52 : vector<4x8x1xf32>
      %55 = math.exp %54 : vector<4x8x1xf32>
      %56 = vector.broadcast %52 : vector<4x8x1xf32> to vector<4x8x8xf32>
      %57 = arith.subf %48, %56 : vector<4x8x8xf32>
      %58 = math.exp %57 : vector<4x8x8xf32>
      %c0_50 = arith.constant 0 : index
      %c0_51 = arith.constant 0 : index
      %c0_52 = arith.constant 0 : index
      %59 = vector.load %arg16[%c0_50, %c0_51, %c0_52] : memref<4x8x1xf32, #tpu.memory_space<vmem>>, vector<4x8x1xf32>
      %60 = arith.mulf %55, %59 : vector<4x8x1xf32>
      %cst_53 = arith.constant dense<0.000000e+00> : vector<4x8xf32>
      %61 = vector.multi_reduction <add>, %58, %cst_53 [2] : vector<4x8x8xf32> to vector<4x8xf32>
      %62 = vector.shape_cast %61 : vector<4x8xf32> to vector<4x8x1xf32>
      %63 = arith.addf %60, %62 : vector<4x8x1xf32>
      %c0_54 = arith.constant 0 : index
      %c0_55 = arith.constant 0 : index
      %c0_56 = arith.constant 0 : index
      %64 = vector.load %arg16[%c0_54, %c0_55, %c0_56] : memref<4x8x1xf32, #tpu.memory_space<vmem>>, vector<4x8x1xf32>
      tpu.vector_store %arg16[%c0_54, %c0_55, %c0_56], %63 {strides = array<i32>} : memref<4x8x1xf32, #tpu.memory_space<vmem>>, vector<4x8x1xf32>,
      %c0_57 = arith.constant 0 : index
      %c0_58 = arith.constant 0 : index
      %c0_59 = arith.constant 0 : index
      %65 = vector.load %arg17[%c0_57, %c0_58, %c0_59] : memref<4x8x32xf32, #tpu.memory_space<vmem>>, vector<4x8x32xf32>
      %66 = vector.broadcast %55 : vector<4x8x1xf32> to vector<4x8x32xf32>
      %67 = arith.mulf %66, %65 : vector<4x8x32xf32>
      "tpu.trace_start"() <{level = 10 : i32, message = "hqk,hkd->hqd"}> : () -> ()
      %cst_60 = arith.constant dense<0.000000e+00> : vector<4x8x32xf32>
      %68 = tpu.matmul %58, %47, %cst_60 {dimension_numbers = #tpu.dot_dimension_numbers<[2], [1], [1], [2], [0, 0, 0, 1, 1, 2], [0], [0]>} : vector<4x8x8xf32>, vector<4x8x32xf32>, vector<4x8x32xf32> -> vector<4x8x32xf32>
      "tpu.trace_stop"() : () -> ()
      %69 = arith.addf %67, %68 : vector<4x8x32xf32>
      %c0_61 = arith.constant 0 : index
      %c0_62 = arith.constant 0 : index
      %c0_63 = arith.constant 0 : index
      %70 = vector.load %arg17[%c0_61, %c0_62, %c0_63] : memref<4x8x32xf32, #tpu.memory_space<vmem>>, vector<4x8x32xf32>
      tpu.vector_store %arg17[%c0_61, %c0_62, %c0_63], %69 {strides = array<i32>} : memref<4x8x32xf32, #tpu.memory_space<vmem>>, vector<4x8x32xf32>,
      %c0_64 = arith.constant 0 : index
      %c0_65 = arith.constant 0 : index
      %c0_66 = arith.constant 0 : index
      %71 = vector.load %arg15[%c0_64, %c0_65, %c0_66] : memref<4x8x1xf32, #tpu.memory_space<vmem>>, vector<4x8x1xf32>
      tpu.vector_store %arg15[%c0_64, %c0_65, %c0_66], %52 {strides = array<i32>} : memref<4x8x1xf32, #tpu.memory_space<vmem>>, vector<4x8x1xf32>,
    }
    %c2_i32_21 = arith.constant 2 : i32
    %c0_22 = arith.constant 0 : index
    %c0_23 = arith.constant 0 : index
    %c0_24 = arith.constant 0 : index
    %28 = vector.load %arg17[%c0_22, %c0_23, %c0_24] : memref<4x8x32xf32, #tpu.memory_space<vmem>>, vector<4x8x32xf32>
    %c0_25 = arith.constant 0 : index
    %c0_26 = arith.constant 0 : index
    %c0_27 = arith.constant 0 : index
    %29 = vector.load %arg16[%c0_25, %c0_26, %c0_27] : memref<4x8x1xf32, #tpu.memory_space<vmem>>, vector<4x8x1xf32>
    %30 = tpu.reciprocal %29 {approx = true} : vector<4x8x1xf32> -> vector<4x8x1xf32>
    %31 = vector.broadcast %30 : vector<4x8x1xf32> to vector<4x8x32xf32>
    %32 = arith.mulf %28, %31 : vector<4x8x32xf32>
    %c0_28 = arith.constant 0 : index
    %c0_29 = arith.constant 0 : index
    %c0_30 = arith.constant 0 : index
    %33 = vector.load %arg10[%c0_28, %c0_29, %c0_30] : memref<4x32x128xf32, #tpu.memory_space<vmem>>, vector<4x32x128xf32>
    "tpu.trace_start"() <{level = 10 : i32, message = "hqd,hde->hqe"}> : () -> ()
    %cst_31 = arith.constant dense<0.000000e+00> : vector<4x8x128xf32>
    %34 = tpu.matmul %32, %33, %cst_31 {dimension_numbers = #tpu.dot_dimension_numbers<[2], [1], [1], [2], [0, 0, 0, 1, 1, 2], [0], [0]>} : vector<4x8x32xf32>, vector<4x32x128xf32>, vector<4x8x128xf32> -> vector<4x8x128xf32>
    "tpu.trace_stop"() : () -> ()
    %cst_32 = arith.constant dense<0.000000e+00> : vector<8x128xf32>
    %35 = vector.multi_reduction <add>, %34, %cst_32 [0] : vector<4x8x128xf32> to vector<8x128xf32>
    %c0_33 = arith.constant 0 : index
    %c0_34 = arith.constant 0 : index
    %36 = vector.load %arg11[%c0_33, %c0_34] : memref<1x128xf32, #tpu.memory_space<vmem>>, vector<1x128xf32>
    %37 = vector.broadcast %36 : vector<1x128xf32> to vector<8x128xf32>
    %38 = arith.addf %35, %37 : vector<8x128xf32>
    %c0_35 = arith.constant 0 : index
    %c0_36 = arith.constant 0 : index
    %c0_37 = arith.constant 0 : index
    %39 = vector.load %arg12[%c0_35, %c0_36, %c0_37] : memref<1x8x128xf32, #tpu.memory_space<vmem>>, vector<1x8x128xf32>
    %40 = vector.shape_cast %39 : vector<1x8x128xf32> to vector<8x128xf32>
    %41 = vector.shape_cast %38 : vector<8x128xf32> to vector<1x8x128xf32>
    tpu.vector_store %arg12[%c0_35, %c0_36, %c0_37], %41 {strides = array<i32>} : memref<1x8x128xf32, #tpu.memory_space<vmem>>, vector<1x8x128xf32>,
    return
  }
  func.func @transform_0(%arg0: i32, %arg1: i32) -> (i32, i32, i32) {
    %c0_i32 = arith.constant 0 : i32
    %c0_i32_0 = arith.constant 0 : i32
    %c0_i32_1 = arith.constant 0 : i32
    return %arg0, %c0_i32, %c0_i32_0 : i32, i32, i32
  }
  func.func @transform_1(%arg0: i32, %arg1: i32) -> (i32, i32, i32) {
    %c0_i32 = arith.constant 0 : i32
    %c0_i32_0 = arith.constant 0 : i32
    return %arg0, %arg1, %c0_i32 : i32, i32, i32
  }
  func.func @transform_2(%arg0: i32, %arg1: i32) -> (i32, i32) {
    %c0_i32 = arith.constant 0 : i32
    %c0_i32_0 = arith.constant 0 : i32
    %c0_i32_1 = arith.constant 0 : i32
    return %c0_i32, %c0_i32_0 : i32, i32
  }
  func.func @transform_3(%arg0: i32, %arg1: i32) -> (i32, i32) {
    %c0_i32 = arith.constant 0 : i32
    %c0_i32_0 = arith.constant 0 : i32
    %c0_i32_1 = arith.constant 0 : i32
    return %c0_i32, %c0_i32_0 : i32, i32
  }
  func.func @transform_4(%arg0: i32, %arg1: i32) -> (i32, i32) {
    %c0_i32 = arith.constant 0 : i32
    %c0_i32_0 = arith.constant 0 : i32
    %c0_i32_1 = arith.constant 0 : i32
    return %c0_i32, %c0_i32_0 : i32, i32
  }
  func.func @transform_5(%arg0: i32, %arg1: i32) -> (i32, i32) {
    %c0_i32 = arith.constant 0 : i32
    %c0_i32_0 = arith.constant 0 : i32
    %c0_i32_1 = arith.constant 0 : i32
    return %c0_i32, %c0_i32_0 : i32, i32
  }
  func.func @transform_6(%arg0: i32, %arg1: i32) -> (i32, i32) {
    %c0_i32 = arith.constant 0 : i32
    %c0_i32_0 = arith.constant 0 : i32
    %c0_i32_1 = arith.constant 0 : i32
    return %c0_i32, %c0_i32_0 : i32, i32
  }
  func.func @transform_7(%arg0: i32, %arg1: i32) -> (i32, i32) {
    %c0_i32 = arith.constant 0 : i32
    %c0_i32_0 = arith.constant 0 : i32
    %c0_i32_1 = arith.constant 0 : i32
    return %c0_i32, %c0_i32_0 : i32, i32
  }
  func.func @transform_8(%arg0: i32, %arg1: i32) -> (i32, i32, i32) {
    %c0_i32 = arith.constant 0 : i32
    %c0_i32_0 = arith.constant 0 : i32
    %c0_i32_1 = arith.constant 0 : i32
    %c0_i32_2 = arith.constant 0 : i32
    return %c0_i32, %c0_i32_0, %c0_i32_1 : i32, i32, i32
  }
  func.func @transform_9(%arg0: i32, %arg1: i32) -> (i32, i32) {
    %c0_i32 = arith.constant 0 : i32
    %c0_i32_0 = arith.constant 0 : i32
    %c0_i32_1 = arith.constant 0 : i32
    return %c0_i32, %c0_i32_0 : i32, i32
  }
  func.func @transform_10(%arg0: i32, %arg1: i32) -> (i32, i32, i32) {
    %c0_i32 = arith.constant 0 : i32
    %c0_i32_0 = arith.constant 0 : i32
    return %arg0, %arg1, %c0_i32 : i32, i32, i32
  }
}

module attributes {stable_mosaic.version = 11 : i64} {
  func.func @mha_kernel(%arg0: i32, %arg1: i32, %arg2: memref<1x16x128xf32, #tpu.memory_space<vmem>>, %arg3: memref<1x8x128xf32, #tpu.memory_space<vmem>>, %arg4: memref<128x128xf32, #tpu.memory_space<vmem>>, %arg5: memref<128x128xf32, #tpu.memory_space<vmem>>, %arg6: memref<128x128xf32, #tpu.memory_space<vmem>>, %arg7: memref<1x128xf32, #tpu.memory_space<vmem>>, %arg8: memref<1x128xf32, #tpu.memory_space<vmem>>, %arg9: memref<1x128xf32, #tpu.memory_space<vmem>>, %arg10: memref<4x32x128xf32, #tpu.memory_space<vmem>>, %arg11: memref<1x128xf32, #tpu.memory_space<vmem>>, %arg12: memref<1x8x128xf32, #tpu.memory_space<vmem>>, %arg13: memref<4x16x32xf32, #tpu.memory_space<vmem>>, %arg14: memref<4x16x32xf32, #tpu.memory_space<vmem>>, %arg15: memref<4x8x1xf32, #tpu.memory_space<vmem>>, %arg16: memref<4x8x1xf32, #tpu.memory_space<vmem>>, %arg17: memref<4x8x32xf32, #tpu.memory_space<vmem>>) attributes {dimension_semantics = [#tpu.dimension_semantics<parallel>, #tpu.dimension_semantics<arbitrary>], iteration_bounds = array<i64: 2, 2>, scalar_prefetch = 0 : i64, scratch_operands = 5 : i64, tpu.core_type = #tpu.core_type<tc>, window_params = [{transform_indices = @transform_0, window_bounds = array<i64: 1, 16, 128>}, {transform_indices = @transform_1, window_bounds = array<i64: 1, 8, 128>}, {pipeline_mode = #tpu.pipeline_mode<synchronous>, transform_indices = @transform_2, window_bounds = array<i64: 128, 128>}, {pipeline_mode = #tpu.pipeline_mode<synchronous>, transform_indices = @transform_3, window_bounds = array<i64: 128, 128>}, {pipeline_mode = #tpu.pipeline_mode<synchronous>, transform_indices = @transform_4, window_bounds = array<i64: 128, 128>}, {pipeline_mode = #tpu.pipeline_mode<synchronous>, transform_indices = @transform_5, window_bounds = array<i64: 1, 128>}, {pipeline_mode = #tpu.pipeline_mode<synchronous>, transform_indices = @transform_6, window_bounds = array<i64: 1, 128>}, {pipeline_mode = #tpu.pipeline_mode<synchronous>, transform_indices = @transform_7, window_bounds = array<i64: 1, 128>}, {pipeline_mode = #tpu.pipeline_mode<synchronous>, transform_indices = @transform_8, window_bounds = array<i64: 4, 32, 128>}, {pipeline_mode = #tpu.pipeline_mode<synchronous>, transform_indices = @transform_9, window_bounds = array<i64: 1, 128>}, {transform_indices = @transform_10, window_bounds = array<i64: 1, 8, 128>}]} {
    %c0_i32 = arith.constant 0 : i32
    %0 = arith.cmpi eq, %arg1, %c0_i32 : i32
    %1 = arith.extui %0 : i1 to i32
    %c0_i32_0 = arith.constant 0 : i32
    %2 = arith.cmpi ne, %1, %c0_i32_0 : i32
    scf.if %2 {
      %c0_38 = arith.constant 0 : index
      %c0_39 = arith.constant 0 : index
      %c0_40 = arith.constant 0 : index
      %42 = vector.load %arg2[%c0_38, %c0_39, %c0_40] : memref<1x16x128xf32, #tpu.memory_space<vmem>>, vector<1x16x128xf32>
      %43 = vector.shape_cast %42 : vector<1x16x128xf32> to vector<16x128xf32>
      %c0_41 = arith.constant 0 : index
      %c0_42 = arith.constant 0 : index
      %44 = vector.load %arg5[%c0_41, %c0_42] : memref<128x128xf32, #tpu.memory_space<vmem>>, vector<128x128xf32>
      %cst_43 = arith.constant dense<0.000000e+00> : vector<16x128xf32>
      %45 = tpu.matmul %43, %44, %cst_43 {dimension_numbers = #tpu.dot_dimension_numbers<[1], [0], [0], [1], [0, 0, 1, 1], [], []>} : vector<16x128xf32>, vector<128x128xf32>, vector<16x128xf32> -> vector<16x128xf32>
      %c0_44 = arith.constant 0 : index
      %c0_45 = arith.constant 0 : index
      %46 = vector.load %arg8[%c0_44, %c0_45] : memref<1x128xf32, #tpu.memory_space<vmem>>, vector<1x128xf32>
      %47 = vector.broadcast %46 : vector<1x128xf32> to vector<16x128xf32>
      %48 = arith.addf %45, %47 : vector<16x128xf32>
      %c0_46 = arith.constant 0 : index
      %c0_47 = arith.constant 0 : index
      %49 = vector.load %arg6[%c0_46, %c0_47] : memref<128x128xf32, #tpu.memory_space<vmem>>, vector<128x128xf32>
      %cst_48 = arith.constant dense<0.000000e+00> : vector<16x128xf32>
      %50 = tpu.matmul %43, %49, %cst_48 {dimension_numbers = #tpu.dot_dimension_numbers<[1], [0], [0], [1], [0, 0, 1, 1], [], []>} : vector<16x128xf32>, vector<128x128xf32>, vector<16x128xf32> -> vector<16x128xf32>
      %c0_49 = arith.constant 0 : index
      %c0_50 = arith.constant 0 : index
      %51 = vector.load %arg9[%c0_49, %c0_50] : memref<1x128xf32, #tpu.memory_space<vmem>>, vector<1x128xf32>
      %52 = vector.broadcast %51 : vector<1x128xf32> to vector<16x128xf32>
      %53 = arith.addf %50, %52 : vector<16x128xf32>
      %54 = vector.extract_strided_slice %48 {offsets = [0, 0], sizes = [16, 32], strides = [1, 1]} : vector<16x128xf32> to vector<16x32xf32>
      %55 = vector.extract_strided_slice %48 {offsets = [0, 32], sizes = [16, 32], strides = [1, 1]} : vector<16x128xf32> to vector<16x32xf32>
      %56 = vector.extract_strided_slice %48 {offsets = [0, 64], sizes = [16, 32], strides = [1, 1]} : vector<16x128xf32> to vector<16x32xf32>
      %57 = vector.extract_strided_slice %48 {offsets = [0, 96], sizes = [16, 32], strides = [1, 1]} : vector<16x128xf32> to vector<16x32xf32>
      %58 = vector.shape_cast %54 : vector<16x32xf32> to vector<1x16x32xf32>
      %59 = vector.shape_cast %55 : vector<16x32xf32> to vector<1x16x32xf32>
      %60 = vector.shape_cast %56 : vector<16x32xf32> to vector<1x16x32xf32>
      %61 = vector.shape_cast %57 : vector<16x32xf32> to vector<1x16x32xf32>
      %62 = tpu.concatenate %58, %59, %60, %61 in 0 : vector<1x16x32xf32>, vector<1x16x32xf32>, vector<1x16x32xf32>, vector<1x16x32xf32> -> vector<4x16x32xf32>
      %c0_51 = arith.constant 0 : index
      %c0_52 = arith.constant 0 : index
      %c0_53 = arith.constant 0 : index
      %63 = vector.load %arg13[%c0_51, %c0_52, %c0_53] : memref<4x16x32xf32, #tpu.memory_space<vmem>>, vector<4x16x32xf32>
      tpu.vector_store %arg13[%c0_51, %c0_52, %c0_53], %62 {strides = array<i32>} : memref<4x16x32xf32, #tpu.memory_space<vmem>>, vector<4x16x32xf32>,
      %64 = vector.extract_strided_slice %53 {offsets = [0, 0], sizes = [16, 32], strides = [1, 1]} : vector<16x128xf32> to vector<16x32xf32>
      %65 = vector.extract_strided_slice %53 {offsets = [0, 32], sizes = [16, 32], strides = [1, 1]} : vector<16x128xf32> to vector<16x32xf32>
      %66 = vector.extract_strided_slice %53 {offsets = [0, 64], sizes = [16, 32], strides = [1, 1]} : vector<16x128xf32> to vector<16x32xf32>
      %67 = vector.extract_strided_slice %53 {offsets = [0, 96], sizes = [16, 32], strides = [1, 1]} : vector<16x128xf32> to vector<16x32xf32>
      %68 = vector.shape_cast %64 : vector<16x32xf32> to vector<1x16x32xf32>
      %69 = vector.shape_cast %65 : vector<16x32xf32> to vector<1x16x32xf32>
      %70 = vector.shape_cast %66 : vector<16x32xf32> to vector<1x16x32xf32>
      %71 = vector.shape_cast %67 : vector<16x32xf32> to vector<1x16x32xf32>
      %72 = tpu.concatenate %68, %69, %70, %71 in 0 : vector<1x16x32xf32>, vector<1x16x32xf32>, vector<1x16x32xf32>, vector<1x16x32xf32> -> vector<4x16x32xf32>
      %c0_54 = arith.constant 0 : index
      %c0_55 = arith.constant 0 : index
      %c0_56 = arith.constant 0 : index
      %73 = vector.load %arg14[%c0_54, %c0_55, %c0_56] : memref<4x16x32xf32, #tpu.memory_space<vmem>>, vector<4x16x32xf32>
      tpu.vector_store %arg14[%c0_54, %c0_55, %c0_56], %72 {strides = array<i32>} : memref<4x16x32xf32, #tpu.memory_space<vmem>>, vector<4x16x32xf32>,
    } else {
    }
    %c0 = arith.constant 0 : index
    %c0_1 = arith.constant 0 : index
    %c0_2 = arith.constant 0 : index
    %3 = vector.load %arg3[%c0, %c0_1, %c0_2] : memref<1x8x128xf32, #tpu.memory_space<vmem>>, vector<1x8x128xf32>
    %4 = vector.shape_cast %3 : vector<1x8x128xf32> to vector<8x128xf32>
    %c0_3 = arith.constant 0 : index
    %c0_4 = arith.constant 0 : index
    %5 = vector.load %arg4[%c0_3, %c0_4] : memref<128x128xf32, #tpu.memory_space<vmem>>, vector<128x128xf32>
    %cst = arith.constant dense<0.000000e+00> : vector<8x128xf32>
    %6 = tpu.matmul %4, %5, %cst {dimension_numbers = #tpu.dot_dimension_numbers<[1], [0], [0], [1], [0, 0, 1, 1], [], []>} : vector<8x128xf32>, vector<128x128xf32>, vector<8x128xf32> -> vector<8x128xf32>
    %c0_5 = arith.constant 0 : index
    %c0_6 = arith.constant 0 : index
    %7 = vector.load %arg7[%c0_5, %c0_6] : memref<1x128xf32, #tpu.memory_space<vmem>>, vector<1x128xf32>
    %8 = vector.broadcast %7 : vector<1x128xf32> to vector<8x128xf32>
    %9 = arith.addf %6, %8 : vector<8x128xf32>
    %cst_7 = arith.constant 0.176776692 : f32
    %10 = vector.broadcast %cst_7 : f32 to vector<8x128xf32>
    %11 = arith.mulf %9, %10 : vector<8x128xf32>
    %12 = vector.extract_strided_slice %11 {offsets = [0, 0], sizes = [8, 32], strides = [1, 1]} : vector<8x128xf32> to vector<8x32xf32>
    %13 = vector.extract_strided_slice %11 {offsets = [0, 32], sizes = [8, 32], strides = [1, 1]} : vector<8x128xf32> to vector<8x32xf32>
    %14 = vector.extract_strided_slice %11 {offsets = [0, 64], sizes = [8, 32], strides = [1, 1]} : vector<8x128xf32> to vector<8x32xf32>
    %15 = vector.extract_strided_slice %11 {offsets = [0, 96], sizes = [8, 32], strides = [1, 1]} : vector<8x128xf32> to vector<8x32xf32>
    %16 = vector.shape_cast %12 : vector<8x32xf32> to vector<1x8x32xf32>
    %17 = vector.shape_cast %13 : vector<8x32xf32> to vector<1x8x32xf32>
    %18 = vector.shape_cast %14 : vector<8x32xf32> to vector<1x8x32xf32>
    %19 = vector.shape_cast %15 : vector<8x32xf32> to vector<1x8x32xf32>
    %20 = tpu.concatenate %16, %17, %18, %19 in 0 : vector<1x8x32xf32>, vector<1x8x32xf32>, vector<1x8x32xf32>, vector<1x8x32xf32> -> vector<4x8x32xf32>
    %cst_8 = arith.constant 0xFF800000 : f32
    %21 = vector.broadcast %cst_8 : f32 to vector<4x8x1xf32>
    %c0_9 = arith.constant 0 : index
    %c0_10 = arith.constant 0 : index
    %c0_11 = arith.constant 0 : index
    %22 = vector.load %arg15[%c0_9, %c0_10, %c0_11] : memref<4x8x1xf32, #tpu.memory_space<vmem>>, vector<4x8x1xf32>
    tpu.vector_store %arg15[%c0_9, %c0_10, %c0_11], %21 {strides = array<i32>} : memref<4x8x1xf32, #tpu.memory_space<vmem>>, vector<4x8x1xf32>,
    %cst_12 = arith.constant 0.000000e+00 : f32
    %23 = vector.broadcast %cst_12 : f32 to vector<4x8x1xf32>
    %c0_13 = arith.constant 0 : index
    %c0_14 = arith.constant 0 : index
    %c0_15 = arith.constant 0 : index
    %24 = vector.load %arg16[%c0_13, %c0_14, %c0_15] : memref<4x8x1xf32, #tpu.memory_space<vmem>>, vector<4x8x1xf32>
    tpu.vector_store %arg16[%c0_13, %c0_14, %c0_15], %23 {strides = array<i32>} : memref<4x8x1xf32, #tpu.memory_space<vmem>>, vector<4x8x1xf32>,
    %cst_16 = arith.constant 0.000000e+00 : f32
    %25 = vector.broadcast %cst_16 : f32 to vector<4x8x32xf32>
    %c0_17 = arith.constant 0 : index
    %c0_18 = arith.constant 0 : index
    %c0_19 = arith.constant 0 : index
    %26 = vector.load %arg17[%c0_17, %c0_18, %c0_19] : memref<4x8x32xf32, #tpu.memory_space<vmem>>, vector<4x8x32xf32>
    tpu.vector_store %arg17[%c0_17, %c0_18, %c0_19], %25 {strides = array<i32>} : memref<4x8x32xf32, #tpu.memory_space<vmem>>, vector<4x8x32xf32>,
    %c0_i32_20 = arith.constant 0 : i32
    %c2_i32 = arith.constant 2 : i32
    %27 = arith.addi %c0_i32_20, %c2_i32 : i32
    %c1_i32 = arith.constant 1 : i32
    scf.for %arg18 = %c0_i32_20 to %27 step %c1_i32  : i32 {
      %c8_i32 = arith.constant 8 : i32
      %42 = arith.muli %arg18, %c8_i32 : i32
      %43 = tpu.assume_multiple %42, 8 : i32
      %c0_38 = arith.constant 0 : index
      %44 = arith.index_cast %43 : i32 to index
      %c0_39 = arith.constant 0 : index
      %45 = vector.load %arg13[%c0_38, %44, %c0_39] : memref<4x16x32xf32, #tpu.memory_space<vmem>>, vector<4x8x32xf32>
      %c0_40 = arith.constant 0 : index
      %46 = arith.index_cast %43 : i32 to index
      %c0_41 = arith.constant 0 : index
      %47 = vector.load %arg14[%c0_40, %46, %c0_41] : memref<4x16x32xf32, #tpu.memory_space<vmem>>, vector<4x8x32xf32>
      "tpu.trace_start"() <{level = 10 : i32, message = "hqd,hkd->hqk"}> : () -> ()
      %cst_42 = arith.constant dense<0.000000e+00> : vector<4x8x8xf32>
      %48 = tpu.matmul %20, %45, %cst_42 {dimension_numbers = #tpu.dot_dimension_numbers<[2], [2], [1], [1], [0, 0, 0, 1, 1, 1], [0], [0]>} : vector<4x8x32xf32>, vector<4x8x32xf32>, vector<4x8x8xf32> -> vector<4x8x8xf32>
      "tpu.trace_stop"() : () -> ()
      %c0_43 = arith.constant 0 : index
      %c0_44 = arith.constant 0 : index
      %c0_45 = arith.constant 0 : index
      %49 = vector.load %arg15[%c0_43, %c0_44, %c0_45] : memref<4x8x1xf32, #tpu.memory_space<vmem>>, vector<4x8x1xf32>
      %cst_46 = arith.constant dense<0xFF800000> : vector<4x8xf32>
      %50 = vector.multi_reduction <maximumf>, %48, %cst_46 [2] : vector<4x8x8xf32> to vector<4x8xf32>
      %51 = vector.shape_cast %50 : vector<4x8xf32> to vector<4x8x1xf32>
      %52 = arith.maximumf %49, %51 : vector<4x8x1xf32>
      %c0_47 = arith.constant 0 : index
      %c0_48 = arith.constant 0 : index
      %c0_49 = arith.constant 0 : index
      %53 = vector.load %arg15[%c0_47, %c0_48, %c0_49] : memref<4x8x1xf32, #tpu.memory_space<vmem>>, vector<4x8x1xf32>
      %54 = arith.subf %53, %52 : vector<4x8x1xf32>
      %55 = math.exp %54 : vector<4x8x1xf32>
      %56 = vector.broadcast %52 : vector<4x8x1xf32> to vector<4x8x8xf32>
      %57 = arith.subf %48, %56 : vector<4x8x8xf32>
      %58 = math.exp %57 : vector<4x8x8xf32>
      %c0_50 = arith.constant 0 : index
      %c0_51 = arith.constant 0 : index
      %c0_52 = arith.constant 0 : index
      %59 = vector.load %arg16[%c0_50, %c0_51, %c0_52] : memref<4x8x1xf32, #tpu.memory_space<vmem>>, vector<4x8x1xf32>
      %60 = arith.mulf %55, %59 : vector<4x8x1xf32>
      %cst_53 = arith.constant dense<0.000000e+00> : vector<4x8xf32>
      %61 = vector.multi_reduction <add>, %58, %cst_53 [2] : vector<4x8x8xf32> to vector<4x8xf32>
      %62 = vector.shape_cast %61 : vector<4x8xf32> to vector<4x8x1xf32>
      %63 = arith.addf %60, %62 : vector<4x8x1xf32>
      %c0_54 = arith.constant 0 : index
      %c0_55 = arith.constant 0 : index
      %c0_56 = arith.constant 0 : index
      %64 = vector.load %arg16[%c0_54, %c0_55, %c0_56] : memref<4x8x1xf32, #tpu.memory_space<vmem>>, vector<4x8x1xf32>
      tpu.vector_store %arg16[%c0_54, %c0_55, %c0_56], %63 {strides = array<i32>} : memref<4x8x1xf32, #tpu.memory_space<vmem>>, vector<4x8x1xf32>,
      %c0_57 = arith.constant 0 : index
      %c0_58 = arith.constant 0 : index
      %c0_59 = arith.constant 0 : index
      %65 = vector.load %arg17[%c0_57, %c0_58, %c0_59] : memref<4x8x32xf32, #tpu.memory_space<vmem>>, vector<4x8x32xf32>
      %66 = vector.broadcast %55 : vector<4x8x1xf32> to vector<4x8x32xf32>
      %67 = arith.mulf %66, %65 : vector<4x8x32xf32>
      "tpu.trace_start"() <{level = 10 : i32, message = "hqk,hkd->hqd"}> : () -> ()
      %cst_60 = arith.constant dense<0.000000e+00> : vector<4x8x32xf32>
      %68 = tpu.matmul %58, %47, %cst_60 {dimension_numbers = #tpu.dot_dimension_numbers<[2], [1], [1], [2], [0, 0, 0, 1, 1, 2], [0], [0]>} : vector<4x8x8xf32>, vector<4x8x32xf32>, vector<4x8x32xf32> -> vector<4x8x32xf32>
      "tpu.trace_stop"() : () -> ()
      %69 = arith.addf %67, %68 : vector<4x8x32xf32>
      %c0_61 = arith.constant 0 : index
      %c0_62 = arith.constant 0 : index
      %c0_63 = arith.constant 0 : index
      %70 = vector.load %arg17[%c0_61, %c0_62, %c0_63] : memref<4x8x32xf32, #tpu.memory_space<vmem>>, vector<4x8x32xf32>
      tpu.vector_store %arg17[%c0_61, %c0_62, %c0_63], %69 {strides = array<i32>} : memref<4x8x32xf32, #tpu.memory_space<vmem>>, vector<4x8x32xf32>,
      %c0_64 = arith.constant 0 : index
      %c0_65 = arith.constant 0 : index
      %c0_66 = arith.constant 0 : index
      %71 = vector.load %arg15[%c0_64, %c0_65, %c0_66] : memref<4x8x1xf32, #tpu.memory_space<vmem>>, vector<4x8x1xf32>
      tpu.vector_store %arg15[%c0_64, %c0_65, %c0_66], %52 {strides = array<i32>} : memref<4x8x1xf32, #tpu.memory_space<vmem>>, vector<4x8x1xf32>,
    }
    %c2_i32_21 = arith.constant 2 : i32
    %c0_22 = arith.constant 0 : index
    %c0_23 = arith.constant 0 : index
    %c0_24 = arith.constant 0 : index
    %28 = vector.load %arg17[%c0_22, %c0_23, %c0_24] : memref<4x8x32xf32, #tpu.memory_space<vmem>>, vector<4x8x32xf32>
    %c0_25 = arith.constant 0 : index
    %c0_26 = arith.constant 0 : index
    %c0_27 = arith.constant 0 : index
    %29 = vector.load %arg16[%c0_25, %c0_26, %c0_27] : memref<4x8x1xf32, #tpu.memory_space<vmem>>, vector<4x8x1xf32>
    %30 = tpu.reciprocal %29 {approx = true} : vector<4x8x1xf32> -> vector<4x8x1xf32>
    %31 = vector.broadcast %30 : vector<4x8x1xf32> to vector<4x8x32xf32>
    %32 = arith.mulf %28, %31 : vector<4x8x32xf32>
    %c0_28 = arith.constant 0 : index
    %c0_29 = arith.constant 0 : index
    %c0_30 = arith.constant 0 : index
    %33 = vector.load %arg10[%c0_28, %c0_29, %c0_30] : memref<4x32x128xf32, #tpu.memory_space<vmem>>, vector<4x32x128xf32>
    "tpu.trace_start"() <{level = 10 : i32, message = "hqd,hde->hqe"}> : () -> ()
    %cst_31 = arith.constant dense<0.000000e+00> : vector<4x8x128xf32>
    %34 = tpu.matmul %32, %33, %cst_31 {dimension_numbers = #tpu.dot_dimension_numbers<[2], [1], [1], [2], [0, 0, 0, 1, 1, 2], [0], [0]>} : vector<4x8x32xf32>, vector<4x32x128xf32>, vector<4x8x128xf32> -> vector<4x8x128xf32>
    "tpu.trace_stop"() : () -> ()
    %cst_32 = arith.constant dense<0.000000e+00> : vector<8x128xf32>
    %35 = vector.multi_reduction <add>, %34, %cst_32 [0] : vector<4x8x128xf32> to vector<8x128xf32>
    %c0_33 = arith.constant 0 : index
    %c0_34 = arith.constant 0 : index
    %36 = vector.load %arg11[%c0_33, %c0_34] : memref<1x128xf32, #tpu.memory_space<vmem>>, vector<1x128xf32>
    %37 = vector.broadcast %36 : vector<1x128xf32> to vector<8x128xf32>
    %38 = arith.addf %35, %37 : vector<8x128xf32>
    %c0_35 = arith.constant 0 : index
    %c0_36 = arith.constant 0 : index
    %c0_37 = arith.constant 0 : index
    %39 = vector.load %arg12[%c0_35, %c0_36, %c0_37] : memref<1x8x128xf32, #tpu.memory_space<vmem>>, vector<1x8x128xf32>
    %40 = vector.shape_cast %39 : vector<1x8x128xf32> to vector<8x128xf32>
    %41 = vector.shape_cast %38 : vector<8x128xf32> to vector<1x8x128xf32>
    tpu.vector_store %arg12[%c0_35, %c0_36, %c0_37], %41 {strides = array<i32>} : memref<1x8x128xf32, #tpu.memory_space<vmem>>, vector<1x8x128xf32>,
    return
  }
  func.func @transform_0(%arg0: i32, %arg1: i32) -> (i32, i32, i32) {
    %c0_i32 = arith.constant 0 : i32
    %c0_i32_0 = arith.constant 0 : i32
    %c0_i32_1 = arith.constant 0 : i32
    return %arg0, %c0_i32, %c0_i32_0 : i32, i32, i32
  }
  func.func @transform_1(%arg0: i32, %arg1: i32) -> (i32, i32, i32) {
    %c0_i32 = arith.constant 0 : i32
    %c0_i32_0 = arith.constant 0 : i32
    return %arg0, %arg1, %c0_i32 : i32, i32, i32
  }
  func.func @transform_2(%arg0: i32, %arg1: i32) -> (i32, i32) {
    %c0_i32 = arith.constant 0 : i32
    %c0_i32_0 = arith.constant 0 : i32
    %c0_i32_1 = arith.constant 0 : i32
    return %c0_i32, %c0_i32_0 : i32, i32
  }
  func.func @transform_3(%arg0: i32, %arg1: i32) -> (i32, i32) {
    %c0_i32 = arith.constant 0 : i32
    %c0_i32_0 = arith.constant 0 : i32
    %c0_i32_1 = arith.constant 0 : i32
    return %c0_i32, %c0_i32_0 : i32, i32
  }
  func.func @transform_4(%arg0: i32, %arg1: i32) -> (i32, i32) {
    %c0_i32 = arith.constant 0 : i32
    %c0_i32_0 = arith.constant 0 : i32
    %c0_i32_1 = arith.constant 0 : i32
    return %c0_i32, %c0_i32_0 : i32, i32
  }
  func.func @transform_5(%arg0: i32, %arg1: i32) -> (i32, i32) {
    %c0_i32 = arith.constant 0 : i32
    %c0_i32_0 = arith.constant 0 : i32
    %c0_i32_1 = arith.constant 0 : i32
    return %c0_i32, %c0_i32_0 : i32, i32
  }
  func.func @transform_6(%arg0: i32, %arg1: i32) -> (i32, i32) {
    %c0_i32 = arith.constant 0 : i32
    %c0_i32_0 = arith.constant 0 : i32
    %c0_i32_1 = arith.constant 0 : i32
    return %c0_i32, %c0_i32_0 : i32, i32
  }
  func.func @transform_7(%arg0: i32, %arg1: i32) -> (i32, i32) {
    %c0_i32 = arith.constant 0 : i32
    %c0_i32_0 = arith.constant 0 : i32
    %c0_i32_1 = arith.constant 0 : i32
    return %c0_i32, %c0_i32_0 : i32, i32
  }
  func.func @transform_8(%arg0: i32, %arg1: i32) -> (i32, i32, i32) {
    %c0_i32 = arith.constant 0 : i32
    %c0_i32_0 = arith.constant 0 : i32
    %c0_i32_1 = arith.constant 0 : i32
    %c0_i32_2 = arith.constant 0 : i32
    return %c0_i32, %c0_i32_0, %c0_i32_1 : i32, i32, i32
  }
  func.func @transform_9(%arg0: i32, %arg1: i32) -> (i32, i32) {
    %c0_i32 = arith.constant 0 : i32
    %c0_i32_0 = arith.constant 0 : i32
    %c0_i32_1 = arith.constant 0 : i32
    return %c0_i32, %c0_i32_0 : i32, i32
  }
  func.func @transform_10(%arg0: i32, %arg1: i32) -> (i32, i32, i32) {
    %c0_i32 = arith.constant 0 : i32
    %c0_i32_0 = arith.constant 0 : i32
    return %arg0, %arg1, %c0_i32 : i32, i32, i32
  }
}

</mosaic_0001>

<bundles_post_ra>
// kernel: tpu_custom_call.1
= control target key start
LH: loop header
LB: loop body
LE: loop exit
PB: predicated region body
PF: predicated region fallthrough
CT: control target
= control target key end

     0   :  { %s2475_s0 = inlined_call_operand.hbm [shape: f32[2,16,128], index: 0, kind: input, shape index: {}]   ;;  %s2476_s1 = inlined_call_operand.hbm [shape: f32[2,16,128], index: 1, kind: input, shape index: {}]   ;;  %s2477_s2 = inlined_call_operand.hbm [shape: f32[128,128], index: 2, kind: input, shape index: {}]   ;;  %s2478_s3 = inlined_call_operand.hbm [shape: f32[128,128], index: 3, kind: input, shape index: {}]   ;;  %s2479_s4 = inlined_call_operand.hbm [shape: f32[128,128], index: 4, kind: input, shape index: {}]   ;;  %s2480_s5 = inlined_call_operand.vmem [shape: f32[1,128], index: 5, kind: input, shape index: {}]   ;;  %s2481_s6 = inlined_call_operand.vmem [shape: f32[1,128], index: 6, kind: input, shape index: {}]   ;;  %s2482_s7 = inlined_call_operand.vmem [shape: f32[1,128], index: 7, kind: input, shape index: {}]   ;;  %s2483_s8 = inlined_call_operand.hbm [shape: f32[4,32,128], index: 8, kind: input, shape index: {}]   ;;  %s2484_s9 = inlined_call_operand.vmem [shape: f32[1,128], index: 9, kind: input, shape index: {}]   ;;  %s2485_s10 = inlined_call_operand.hbm [shape: f32[2,16,128], index: 10, kind: output, shape index: {}]  }
   0x1   :  { %2496 = sst [smem:[#allocation33_spill]] %s2475_s0 }
   0x2   :  { %2497 = sst [smem:[#allocation34_spill]] %s2477_s2 }
   0x3   :  { %2498 = sst [smem:[#allocation35_spill]] %s2478_s3 }
   0x4   :  { %2499 = sst [smem:[#allocation36_spill]] %s2479_s4 }
   0x5   :  { %2500 = sst [smem:[#allocation37_spill]] %s2480_s5 }
   0x6   :  { %2501 = sst [smem:[#allocation38_spill]] %s2481_s6 }
   0x7   :  { %2502 = sst [smem:[#allocation39_spill]] %s2482_s7 }
   0x8   :  { %2503 = sst [smem:[#allocation40_spill]] %s2483_s8 }
   0x9   :  { %2504 = sst [smem:[#allocation41_spill]] %s2484_s9 }
   0xa   :  { %2505 = sst [smem:[#allocation42_spill]] %s2485_s10 }
   0xb   :  { %15 = vsyncpa [#allocation8], 0 }
   0xc   :  { %17 = vsyncpa [#allocation8 + $0x1], 0 }
   0xd   :  { %18 = vsyncpa [#allocation11], 0 }
   0xe   :  { %20 = vsyncpa [#allocation11 + $0x1], 0 }
   0xf   :  { %21 = vsyncpa [#allocation14], 0 }
  0x10   :  { %22 = vsyncpa [#allocation17], 0 }
  0x11   :  { %23 = vsyncpa [#allocation9], 0 }
  0x12   :  { %25 = vsyncpa [#allocation9 + $0x1], 0  ;;  %s2061_s13 = smov 0   ;;  %s2063_s14 = smov 0  }
  0x13   :  { %s2065_s15 = smov 0   ;;  %s2067_s16 = smov 0  }
  0x14   :  { %s2069_s17 = smov 0   ;;  %s2071_s18 = smov 0  }
  0x15   :  { %s2073_s19 = smov 0   ;;  %s2075_s20 = smov 0  }
  0x16   :  { %s2077_s21 = smov 0   ;;  %s2079_s22 = smov 0  }
  0x17   :  { %s2081_s23 = smov 0  }
  0x18 LB: > { %2506 = sst [smem:[#allocation25_spill]] %s1944_s13  ;;  %s2117_s24 = sadd.s32 4294967295, %s1984_s23   ;;  %s1984_s23 = sphi %s2081_s23, %s31_s23   ;;  %s1980_s22 = sphi %s2079_s22, %s2555_s22   ;;  %s1976_s21 = sphi %s2077_s21, %s2554_s21   ;;  %s1972_s20 = sphi %s2075_s20, %s2553_s20   ;;  %s1968_s19 = sphi %s2073_s19, %s2552_s19   ;;  %s1964_s18 = sphi %s2071_s18, %s2551_s18   ;;  %s1960_s17 = sphi %s2069_s17, %s2550_s17   ;;  %s1956_s16 = sphi %s2067_s16, %s2549_s16   ;;  %s1952_s15 = sphi %s2065_s15, %s2548_s15   ;;  %s1948_s14 = sphi %s2063_s14, %s2547_s14   ;;  %s1944_s13 = sphi %s2061_s13, %s2546_s13  }
  0x19   : > { %2507 = sst [smem:[#allocation26_spill]] %s1968_s19  ;;  %p1385_p0 = scmp.ge.s32.totalorder %s1984_s23, 1 }
  0x1a   : > { %2508 = sst [smem:[#allocation27_spill]] %s1972_s20  ;;  %p2487_p1 = scmp.eq.s32.totalorder %s2117_s24, 0 }
  0x1b   : > { %p298_p2 = scmp.lt.s32.totalorder %s1984_s23, 5  ;;  %s2509_s2 = sld [smem:[#allocation34_spill]] }
  0x1c   : > { %s1990_s29 = smov [#allocation12]   ;;  %s2512_s3 = sld [smem:[#allocation35_spill]] }
  0x1d   : > { %p2125_p3 = pnand %p1385_p0, %p298_p2  ;;  %s311_s30 = sshll.u32 %s1990_s29, 4  ;;  %s312_s30 = int_to_ptr.vmem [resolvable:$true] %s311_s30 }
  0x1e   : > { %s1991_s26 = smov 128   ;;  %s1993_s29 = smov [#allocation13]  }
  0x1f   : > { %p1483_p4 = pneg %p2125_p3  ;;  %s325_s10 = sshll.u32 %s1993_s29, 4  ;;  %s326_s10 = int_to_ptr.vmem [resolvable:$true] %s325_s10 }
  0x20   : > { %s2513_s4 = sld [smem:[#allocation36_spill]]  ;;  %s1994_s5 = smov [#allocation15]  }
  0x21   : > { %s309_s27 = sshll.u32 %s2509_s2, 4  ;;  %p2133_p5 = pnand %p1483_p4, %p2487_p1  ;;  %s310_s27 = int_to_ptr.hbm [resolvable:$true] %s309_s27 }
  0x22   : > { %s323_s25 = sshll.u32 %s2512_s3, 4  ;;  %s1992_s2 = smov 8   ;;  %s324_s25 = int_to_ptr.hbm [resolvable:$true] %s323_s25 }
  0x23   : > { %1486 = dma.hbm_to_vmem [thread:$0]  (!%p2133_p5), %s310_s27, 2048, %s312_s30, [#allocation11], %s1991_s26, %s1991_s26, %s1992_s2  }
  0x24   : > { %1489 = dma.hbm_to_vmem [thread:$0]  (!%p2133_p5), %s324_s25, 2048, %s326_s10, [#allocation14], %s1991_s26, %s1991_s26, %s1992_s2  }
  0x25   : > { %s2514_s8 = sld [smem:[#allocation40_spill]]  ;;  %s339_s20 = sshll.u32 %s1994_s5, 4  ;;  %s340_s20 = int_to_ptr.vmem [resolvable:$true] %s339_s20 }
  0x26   : > { %s337_s9 = sshll.u32 %s2513_s4, 4  ;;  %s1995_s29 = smov [#allocation16]   ;;  %s338_s9 = int_to_ptr.hbm [resolvable:$true] %s337_s9 }
  0x27   : > { %1492 = dma.hbm_to_vmem [thread:$0]  (!%p2133_p5), %s338_s9, 2048, %s340_s20, [#allocation14], %s1991_s26, %s1991_s26, %s1992_s2  }
  0x28   : > { %s362_s3 = sshll.u32 %s1995_s29, 4  ;;  %s50_s10 = sadd.s32 1, %s1964_s18  ;;  %s363_s3 = int_to_ptr.vmem [resolvable:$true] %s362_s3 }
  0x29   : > { %p57_p6 = scmp.ne.s32.totalorder %s1964_s18, %s1960_s17  ;;  %p58_p7 = scmp.eq.s32.totalorder %s1984_s23, 0 }
  0x2a   : > { %p63_p8 = scmp.ne.s32.totalorder %s1960_s17, %s1956_s16  ;;  %p1511_p9 = scmp.lt.s32.totalorder %s1984_s23, 4 }
  0x2b   : > { %s360_s12 = sshll.u32 %s2514_s8, 4  ;;  %s379_s25 = sand.u32 1, %s1964_s18   ;;  %s361_s12 = int_to_ptr.hbm [resolvable:$true] %s360_s12 }
  0x2c   : > { %1495 = dma.hbm_to_vmem [thread:$0]  (!%p2133_p5), %s361_s12, 2048, %s363_s3, [#allocation17], %s1991_s26, %s1991_s26, %s1992_s2  }
  0x2d   : > { %p59_p10 = por %p58_p7, %p57_p6  ;;  %p2178_p11 = por %p2487_p1, %p63_p8 }
  0x2e   : > { %s1391_s11 = sshll.u32 %s379_s25, 4  ;;  %s1428_s3 = sshll.u32 %s1980_s22, 4 }
  0x2f   : > { %s2516_s0 = sld [smem:[#allocation33_spill]]  ;;  %s383_s12 = scalar_lea.vmem [#allocation7], %s1391_s11 }
  0x30   : > { %s391_s5 = sshll.u32 %s383_s12, 4  ;;  %p1497_p12 = pnand %p1511_p9, %p59_p10  ;;  %s392_s5 = int_to_ptr.vmem [resolvable:$true] %s391_s5 }
  0x31   : > { %s380_s29 = scalar_lea.sflag [#allocation8], %s379_s25  ;;  %s1384_s27 = sadd.s32 4294967294, %s1984_s23  }
  0x32   : > { %s40_s30 = sadd.s32 1, %s1976_s21  ;;  %s78_s11 = sadd.s32 1, %s1952_s15 }
  0x33   : > { %p41_p13 = scmp.ge.s32.totalorder %s40_s30, 2  ;;  %p85_p0 = scmp.ne.s32.totalorder %s1952_s15, %s1948_s14 }
  0x34   : > { %p91_p2 = scmp.ne.s32.totalorder %s1948_s14, %s1944_s13  ;;  %p285_p8 = scmp.eq.s32.totalorder %s2117_s24, 3 }
  0x35   : > { %s388_s16 = scalar_lea.hbm %s2516_s0, %s1428_s3  ;;  %s43_s3 = sadd.s32 1, %s1980_s22 }
  0x36   : > { %s389_s20 = sshll.u32 %s388_s16, 4  ;;  %s2557_s30 = smov (%p41_p13, %s40_s30), 0  ;;  %s390_s20 = int_to_ptr.hbm [resolvable:$true] %s389_s20 }
  0x37   : > { %1499 = dma.hbm_to_vmem [thread:$0]  (!%p1497_p12), %s390_s20, 256, %s392_s5, %s380_s29, %s1991_s26, %s1991_s26, %s1992_s2  }
  0x38   : > { %2517 = sst [smem:[#allocation28_spill]] %s2557_s30  ;;  %s2559_s3 = smov (!%p41_p13, %s43_s3), %s1980_s22 }
  0x39   : > { %s74_s25 = ssub.s32 %s1976_s21, %s2557_s30  ;;  %p2206_p4 = por %p85_p0, %p58_p7 }
  0x3a   : > { %p45_p5 = scmp.ge.s32.totalorder %s2559_s3, 2  ;;  %p2212_p6 = por %p91_p2, %p2487_p1 }
  0x3b   : > { %p291_p10 = scmp.eq.s32.totalorder %s1384_s27, 3  ;;  %p2219_p12 = por %p285_p8, %p85_p0 }
  0x3c   : > { %s2519_s26 = scalar_select %p2212_p6, 1, 0 }
  0x3d   : > { %s2561_s3 = smov (%p45_p5, %s2559_s3), 0  ;;  %p2223_p7 = por %p291_p10, %p91_p2 }
  0x3e   : > { %2520 = sst [smem:[#allocation29_spill]] %s2519_s26  ;;  %s47_s5 = ssub.s32 %s1980_s22, %s2561_s3 }
  0x3f   : > { %2521 = sst [smem:[#allocation30_spill]] %s2561_s3  ;;  %s401_s20 = sand.u32 1, %s1984_s23  }
  0x40   : > { %s2522_s16 = scalar_select %p2219_p12, 1, 0 }
  0x41   : > { %s2524_s12 = scalar_select %p2223_p7, 1, 0 }
  0x42   : > { %2523 = sst [smem:[#allocation31_spill]] %s2522_s16  ;;  %p48_p13 = scmp.eq.s32.totalorder %s47_s5, 0 }
  0x43   : > { %2525 = sst [smem:[#allocation32_spill]] %s2524_s12  ;;  %s75_s29 = sor.u32 %s74_s25, %s47_s5 }
  0x44   : > { %p76_p1 = scmp.eq.s32.totalorder %s75_s29, 0  ;;  %s403_s4 = sand.u32 1, %s1952_s15  }
  0x45   : > { %s2233_s27 = scalar_select %p48_p13, %s1964_s18, %s50_s10  }
  0x46   : > { %s2236_s0 = scalar_select %p76_p1, %s1952_s15, %s78_s11  }
  0x47   : > { %s1395_s8 = sshll.u32 %s1980_s22, 1  ;;  %s1394_s30 = sshll.u32 %s403_s4, 3 }
  0x48   : > { %s409_s13 = sadd.s32 %s1976_s21, %s1395_s8  ;;  %s405_s12 = scalar_lea.vmem [#allocation10], %s1394_s30 }
  0x49   : > { %s1396_s16 = sshll.u32 %s409_s13, 3  ;;  %s415_s19 = sshll.u32 %s405_s12, 4  ;;  %s416_s19 = int_to_ptr.vmem [resolvable:$true] %s415_s19 }
  0x4a   : > { %s411_s3 = scalar_lea.hbm %s2476_s1, %s1396_s16  ;;  %p1500_p0 = pnand %p1511_p9, %p2206_p4 }
  0x4b   : > { %s413_s26 = sshll.u32 %s411_s3, 4  ;;  %s402_s10 = scalar_lea.sflag [#allocation11], %s401_s20  ;;  %s414_s26 = int_to_ptr.hbm [resolvable:$true] %s413_s26 }
  0x4c   : > { %1502 = dma.hbm_to_vmem [thread:$0]  (!%p1500_p0), %s414_s26, 128, %s416_s19, %s402_s10  }
  0x4d   : > { %424 = sbr.rel (%p2125_p3) target bundleno = 1468 (0x5bc), region = 60  ;;  %s426_s4 = sand.u32 (!%p2125_p3), 1, %s1960_s17  }
  0x4e   : > { %s2251_s8 = sshll.u32 (!%p2125_p3), %s426_s4, 4  ;;  %s427_s6 = scalar_lea.sflag (!%p2125_p3), [#allocation8], %s426_s4 }
  0x4f   : > { %s430_s7 = scalar_lea.vmem (!%p2125_p3), [#allocation7], %s2251_s8 }
  0x52   : > { %1919 = dma.done.wait (%p2178_p11), %s427_s6, 256  }
  0x53   : > { %1921 = vsyncadd (%p2178_p11), %s427_s6, 4294967040  ;;  %s436_s19 = sand.u32 1, %s2117_s24   ;;  %s438_s28 = sand.u32 1, %s1948_s14  }
  0x54   : > { %s2262_s30 = sshll.u32 %s438_s28, 3  ;;  %s437_s3 = scalar_lea.sflag [#allocation11], %s436_s19 }
  0x55   : > { %s440_s11 = scalar_lea.vmem [#allocation10], %s2262_s30 }
  0x56   : > { %1923 = dma.done.wait (%p2212_p6), %s437_s3, 128  }
  0x57   : > { %1925 = vsyncadd (%p2212_p6), %s437_s3, 4294967168  ;;  %p2527_p1 = scmp.eq.s32.totalorder %s2117_s24, 0 }
  0x59   : > { %1927 = dma.done.wait (%p2527_p1), [#allocation11], 2048   ;;  %p2528_p3 = pmov %p2527_p1 }
  0x5a   : > { %p2529_p9 = pmov %p2527_p1 }
  0x5b   : > { %1929 = vsyncadd (%p2528_p3), [#allocation11], 4294965248 }
  0x5c   : > { %1931 = dma.done.wait (%p2529_p9), [#allocation14], 4096   ;;  %p2530_p11 = pmov %p2527_p1 }
  0x5d   : > { %p2531_p2 = pmov %p2527_p1 }
  0x5e   : > { %1933 = vsyncadd (%p2530_p11), [#allocation14], 4294963200 }
  0x5f   : > { %1935 = dma.done.wait (%p2531_p2), [#allocation17], 2048   ;;  %p2532_p4 = pmov %p2527_p1 }
  0x60   : > { %s502_s9 = scalar_lea.vmem [#allocation18], %s2262_s30  ;;  %s2533_s25 = sld [smem:[#allocation26_spill]] }
  0x61   : > { %1937 = vsyncadd (%p2532_p4), [#allocation17], 4294965248 }
  0x66   : > { %p1405_p5 = scmp.ne.s32.totalorder %s2533_s25, 0 }
  0x67   : > { %s2534_s26 = sld [smem:[#allocation38_spill]] (!%p1405_p5)  ;;  %s1996_s20 = smov (!%p1405_p5), 32  }
  0x68   : > { %506 = sbr.rel (%p1405_p5) target bundleno = 410 (0x19a), region = 88  ;;  %s2535_s5 = sld [smem:[#allocation39_spill]] (!%p1405_p5) }
  0x69   : > { %s1997_s29 = smov (!%p1405_p5), 64   ;;  %s1998_s10 = smov (!%p1405_p5), 96  }
  0x6d   : > { %v524_v0 = vld [vmem:[#allocation13 + $0x78] sm:$0xff]  ;;  %v523_v1 = vld [vmem:[#allocation13 + $0x70] sm:$0xff]  ;;  %v522_v3 = vld [vmem:[#allocation13 + $0x68] sm:$0xff]  ;;  %vm615_vm0 = vcmask 261120  }
  0x6e   : > { %529 = vmatpush.msra.mxu0 %v524_v0  ;;  %1429 = vmatpush.msra.mxu2 %v524_v0  ;;  %v567_v2 = vld [vmem:[#allocation15 + $0x78] sm:$0xff]  ;;  %v566_v4 = vld [vmem:[#allocation15 + $0x70] sm:$0xff]  ;;  %v565_v5 = vld [vmem:[#allocation15 + $0x68] sm:$0xff] }
  0x6f   : > { %572 = vmatpush.msra.mxu1 %v567_v2  ;;  %1445 = vmatpush.msra.mxu3 %v567_v2  ;;  %v521_v6 = vld [vmem:[#allocation13 + $0x60] sm:$0xff]  ;;  %v520_v8 = vld [vmem:[#allocation13 + $0x58] sm:$0xff]  ;;  %v519_v10 = vld [vmem:[#allocation13 + $0x50] sm:$0xff] }
  0x70   : > { %530 = vmatpush.msra.mxu0 %v523_v1  ;;  %1430 = vmatpush.msra.mxu2 %v523_v1  ;;  %v564_v7 = vld [vmem:[#allocation15 + $0x60] sm:$0xff]  ;;  %v563_v9 = vld [vmem:[#allocation15 + $0x58] sm:$0xff]  ;;  %v562_v11 = vld [vmem:[#allocation15 + $0x50] sm:$0xff] }
  0x71   : > { %573 = vmatpush.msra.mxu1 %v566_v4  ;;  %1446 = vmatpush.msra.mxu3 %v566_v4  ;;  %v518_v12 = vld [vmem:[#allocation13 + $0x48] sm:$0xff]  ;;  %v517_v14 = vld [vmem:[#allocation13 + $0x40] sm:$0xff]  ;;  %v516_v16 = vld [vmem:[#allocation13 + $0x38] sm:$0xff] }
  0x72   : > { %531 = vmatpush.msra.mxu0 %v522_v3  ;;  %1431 = vmatpush.msra.mxu2 %v522_v3  ;;  %v561_v13 = vld [vmem:[#allocation15 + $0x48] sm:$0xff]  ;;  %v560_v15 = vld [vmem:[#allocation15 + $0x40] sm:$0xff]  ;;  %v559_v17 = vld [vmem:[#allocation15 + $0x38] sm:$0xff] }
  0x73   : > { %574 = vmatpush.msra.mxu1 %v565_v5  ;;  %1447 = vmatpush.msra.mxu3 %v565_v5  ;;  %v515_v18 = vld [vmem:[#allocation13 + $0x30] sm:$0xff]  ;;  %v514_v20 = vld [vmem:[#allocation13 + $0x28] sm:$0xff]  ;;  %v513_v22 = vld [vmem:[#allocation13 + $0x20] sm:$0xff] }
  0x74   : > { %532 = vmatpush.msra.mxu0 %v521_v6  ;;  %1432 = vmatpush.msra.mxu2 %v521_v6  ;;  %v558_v19 = vld [vmem:[#allocation15 + $0x30] sm:$0xff]  ;;  %v557_v21 = vld [vmem:[#allocation15 + $0x28] sm:$0xff]  ;;  %v556_v23 = vld [vmem:[#allocation15 + $0x20] sm:$0xff] }
  0x75   : > { %575 = vmatpush.msra.mxu1 %v564_v7  ;;  %1448 = vmatpush.msra.mxu3 %v564_v7  ;;  %v512_v24 = vld [vmem:[#allocation13 + $0x18] sm:$0xff]  ;;  %v511_v26 = vld [vmem:[#allocation13 + $0x10] sm:$0xff]  ;;  %v510_v28 = vld [vmem:[#allocation13 + $0x8] sm:$0xff] }
  0x76   : > { %533 = vmatpush.msra.mxu0 %v520_v8  ;;  %1433 = vmatpush.msra.mxu2 %v520_v8  ;;  %v555_v25 = vld [vmem:[#allocation15 + $0x18] sm:$0xff]  ;;  %v554_v27 = vld [vmem:[#allocation15 + $0x10] sm:$0xff]  ;;  %v553_v29 = vld [vmem:[#allocation15 + $0x8] sm:$0xff] }
  0x77   : > { %576 = vmatpush.msra.mxu1 %v563_v9  ;;  %1449 = vmatpush.msra.mxu3 %v563_v9  ;;  %v509_v30 = vld [vmem:[#allocation13] sm:$0xff]  ;;  %v508_v32 = vld [vmem:[%s430_s7 + $0x8] sm:$0xff]  ;;  %v1629_v34 = vld [vmem:[%s2534_s26] ss:$0 sm:$0xff] }
  0x78   : > { %534 = vmatpush.msra.mxu0 %v519_v10  ;;  %1434 = vmatpush.msra.mxu2 %v519_v10  ;;  %v507_v31 = vld [vmem:[%s430_s7] sm:$0xff] }
  0x79   : > { %577 = vmatpush.msra.mxu1 %v562_v11  ;;  %1450 = vmatpush.msra.mxu3 %v562_v11  ;;  %v552_v33 = vld [vmem:[#allocation15] sm:$0xff]  ;;  %v1630_v35 = vld [vmem:[%s2535_s5] ss:$0 sm:$0xff] }
  0x7a   : > { %535 = vmatpush.msra.mxu0 %v518_v12  ;;  %1435 = vmatpush.msra.mxu2 %v518_v12 }
  0x7b   : > { %578 = vmatpush.msra.mxu1 %v561_v13  ;;  %1451 = vmatpush.msra.mxu3 %v561_v13 }
  0x7c   : > { %536 = vmatpush.msra.mxu0 %v517_v14  ;;  %1436 = vmatpush.msra.mxu2 %v517_v14 }
  0x7d   : > { %579 = vmatpush.msra.mxu1 %v560_v15  ;;  %1452 = vmatpush.msra.mxu3 %v560_v15 }
  0x7e   : > { %537 = vmatpush.msra.mxu0 %v516_v16  ;;  %1437 = vmatpush.msra.mxu2 %v516_v16 }
  0x7f   : > { %580 = vmatpush.msra.mxu1 %v559_v17  ;;  %1453 = vmatpush.msra.mxu3 %v559_v17 }
  0x80   : > { %538 = vmatpush.msra.mxu0 %v515_v18  ;;  %1438 = vmatpush.msra.mxu2 %v515_v18 }
  0x81   : > { %581 = vmatpush.msra.mxu1 %v558_v19  ;;  %1454 = vmatpush.msra.mxu3 %v558_v19 }
  0x82   : > { %539 = vmatpush.msra.mxu0 %v514_v20  ;;  %1439 = vmatpush.msra.mxu2 %v514_v20 }
  0x83   : > { %582 = vmatpush.msra.mxu1 %v557_v21  ;;  %1455 = vmatpush.msra.mxu3 %v557_v21 }
  0x84   : > { %540 = vmatpush.msra.mxu0 %v513_v22  ;;  %1440 = vmatpush.msra.mxu2 %v513_v22 }
  0x85   : > { %583 = vmatpush.msra.mxu1 %v556_v23  ;;  %1456 = vmatpush.msra.mxu3 %v556_v23 }
  0x86   : > { %541 = vmatpush.msra.mxu0 %v512_v24  ;;  %1441 = vmatpush.msra.mxu2 %v512_v24 }
  0x87   : > { %584 = vmatpush.msra.mxu1 %v555_v25  ;;  %1457 = vmatpush.msra.mxu3 %v555_v25 }
  0x88   : > { %542 = vmatpush.msra.mxu0 %v511_v26  ;;  %1442 = vmatpush.msra.mxu2 %v511_v26 }
  0x89   : > { %585 = vmatpush.msra.mxu1 %v554_v27  ;;  %1458 = vmatpush.msra.mxu3 %v554_v27 }
  0x8a   : > { %543 = vmatpush.msra.mxu0 %v510_v28  ;;  %1443 = vmatpush.msra.mxu2 %v510_v28 }
  0x8b   : > { %586 = vmatpush.msra.mxu1 %v553_v29  ;;  %1459 = vmatpush.msra.mxu3 %v553_v29 }
  0x8c   : > { %544 = vmatpush.msra.mxu0 %v509_v30  ;;  %1444 = vmatpush.msra.mxu2 %v509_v30 }
  0x8d   : > { %545 = vmatmul.f32.vlgmr.msra.gmra.mxu0 %v507_v31  ;;  %548 = vmatmul.f32.vlgmr.msra.gmra.mxu2 %v508_v32 }
  0x8e   : > { %587 = vmatpush.msra.mxu1 %v552_v33  ;;  %1460 = vmatpush.msra.mxu3 %v552_v33 }
  0x8f   : > { %588 = vmatmul.f32.vlgmr.msra.gmra.mxu1 %v507_v31  ;;  %591 = vmatmul.f32.vlgmr.msra.gmra.mxu3 %v508_v32 }
 0x10a   : > { %v546_v36 = vpop.f32.mrf.mxu0 }
 0x10b   : > { %v547_v37 = vadd.f32 %v1629_v34, %v546_v36 }
 0x10c   : > { %v589_v38 = vpop.f32.mrf.mxu1 }
 0x10d   : > { %616 = vst.msk [vmem:[#allocation2] sm:$0xff] %vm615_vm0, %v547_v37  ;;  %609 = vrot.lane.b32.xlu2 %v547_v37, %s1996_s20  ;;  %603 = vrot.lane.b32.xlu1 %v547_v37, %s1997_s29  ;;  %v590_v39 = vadd.f32 %v1630_v35, %v589_v38 }
 0x10e   : > { %597 = vrot.lane.b32.xlu0 %v547_v37, %s1998_s10 }
 0x10f   : > { %644 = vst.msk [vmem:[#allocation3] sm:$0xff] %vm615_vm0, %v590_v39 }
 0x110   : > { %v549_v40 = vpop.f32.mrf.mxu2 }
 0x111   : > { %v550_v41 = vadd.f32 %v1629_v34, %v549_v40 }
 0x112   : > { %v592_v42 = vpop.f32.mrf.mxu3 }
 0x113   : > { %617 = vst.msk [vmem:[#allocation2 + $0x8] sm:$0xff] %vm615_vm0, %v550_v41  ;;  %v593_v43 = vadd.f32 %v1630_v35, %v592_v42 }
 0x115   : > { %632 = vrot.lane.b32.xlu2 %v590_v39, %s1997_s29  ;;  %605 = vrot.lane.b32.xlu1 %v550_v41, %s1997_s29  ;;  %645 = vst.msk [vmem:[#allocation3 + $0x8] sm:$0xff] %vm615_vm0, %v593_v43 }
 0x116   : > { %626 = vrot.lane.b32.xlu0 %v590_v39, %s1998_s10 }
 0x11d   : > { %611 = vrot.lane.b32.xlu2 %v550_v41, %s1996_s20  ;;  %628 = vrot.lane.b32.xlu1 %v593_v43, %s1998_s10 }
 0x11e   : > { %599 = vrot.lane.b32.xlu0 %v550_v41, %s1998_s10 }
 0x125   : > { %640 = vrot.lane.b32.xlu2 %v593_v43, %s1996_s20  ;;  %638 = vrot.lane.b32.xlu1 %v590_v39, %s1996_s20 }
 0x126   : > { %634 = vrot.lane.b32.xlu0 %v593_v43, %s1997_s29 }
 0x167   : > { %v610_v44 = vpop.permute.xlu2 %609 }
 0x168   : > { %622 = vst.msk [vmem:[#allocation2 + $0x30] sm:$0xff] %vm615_vm0, %v610_v44 }
 0x16f   : > { %v633_v45 = vpop.permute.xlu2 %632 }
 0x170   : > { %648 = vst.msk [vmem:[#allocation3 + $0x20] sm:$0xff] %vm615_vm0, %v633_v45 }
 0x177   : > { %v612_v46 = vpop.permute.xlu2 %611 }
 0x178   : > { %623 = vst.msk [vmem:[#allocation2 + $0x38] sm:$0xff] %vm615_vm0, %v612_v46 }
 0x17f   : > { %v641_v47 = vpop.permute.xlu2 %640  ;;  %v604_v48 = vpop.permute.xlu1 %603 }
 0x180   : > { %651 = vst.msk [vmem:[#allocation3 + $0x38] sm:$0xff] %vm615_vm0, %v641_v47  ;;  %v598_v49 = vpop.permute.xlu0 %597 }
 0x181   : > { %620 = vst.msk [vmem:[#allocation2 + $0x20] sm:$0xff] %vm615_vm0, %v604_v48 }
 0x182   : > { %618 = vst.msk [vmem:[#allocation2 + $0x10] sm:$0xff] %vm615_vm0, %v598_v49 }
 0x187   : > { %v606_v50 = vpop.permute.xlu1 %605 }
 0x188   : > { %621 = vst.msk [vmem:[#allocation2 + $0x28] sm:$0xff] %vm615_vm0, %v606_v50  ;;  %v627_v51 = vpop.permute.xlu0 %626 }
 0x189   : > { %646 = vst.msk [vmem:[#allocation3 + $0x10] sm:$0xff] %vm615_vm0, %v627_v51 }
 0x18f   : > { %v629_v52 = vpop.permute.xlu1 %628 }
 0x190   : > { %647 = vst.msk [vmem:[#allocation3 + $0x18] sm:$0xff] %vm615_vm0, %v629_v52  ;;  %v600_v53 = vpop.permute.xlu0 %599 }
 0x191   : > { %619 = vst.msk [vmem:[#allocation2 + $0x18] sm:$0xff] %vm615_vm0, %v600_v53 }
 0x197   : > { %v639_v54 = vpop.permute.xlu1 %638 }
 0x198   : > { %650 = vst.msk [vmem:[#allocation3 + $0x30] sm:$0xff] %vm615_vm0, %v639_v54  ;;  %v635_v55 = vpop.permute.xlu0 %634 }
 0x199   : > { %649 = vst.msk [vmem:[#allocation3 + $0x28] sm:$0xff] %vm615_vm0, %v635_v55 }
 0x19a PF: > { %v668_v56 = vld [vmem:[#allocation12 + $0x78] sm:$0xff]  ;;  %v667_v57 = vld [vmem:[#allocation12 + $0x70] sm:$0xff]  ;;  %v666_v58 = vld [vmem:[#allocation12 + $0x68] sm:$0xff]  ;;  %s2536_s6 = sld [smem:[#allocation37_spill]]  ;;  %s1999_s7 = smov 32   ;;  %vm701_vm1 = vcmask 7168  }
 0x19b   : > { %673 = vmatpush.msra.mxu0 %v668_v56  ;;  %v665_v59 = vld [vmem:[#allocation12 + $0x60] sm:$0xff]  ;;  %v664_v60 = vld [vmem:[#allocation12 + $0x58] sm:$0xff]  ;;  %v663_v61 = vld [vmem:[#allocation12 + $0x50] sm:$0xff]  ;;  %s2000_s13 = smov 96   ;;  %s2001_s19 = smov 64   ;;  %v2002_v13 = vmov -inf  }
 0x19c   : > { %v662_v62 = vld [vmem:[#allocation12 + $0x48] sm:$0xff]  ;;  %v661_v63 = vld [vmem:[#allocation12 + $0x40] sm:$0xff]  ;;  %v660_v0 = vld [vmem:[#allocation12 + $0x38] sm:$0xff]  ;;  %702 = vst.msk [vmem:[#allocation4] sm:$0xff] %vm701_vm1, %v2002_v13  ;;  %v2003_v14 = vmov 0.0   ;;  %vm710_vm2 = vcmask 261120  }
 0x19d   : > { %674 = vmatpush.msra.mxu0 %v667_v57  ;;  %v659_v1 = vld [vmem:[#allocation12 + $0x30] sm:$0xff]  ;;  %v658_v2 = vld [vmem:[#allocation12 + $0x28] sm:$0xff]  ;;  %v657_v3 = vld [vmem:[#allocation12 + $0x20] sm:$0xff]  ;;  %703 = vst.msk [vmem:[#allocation4 + $0x8] sm:$0xff] %vm701_vm1, %v2002_v13  ;;  %s2337_s3 = smov 0  }
 0x19e   : > { %v656_v4 = vld [vmem:[#allocation12 + $0x18] sm:$0xff]  ;;  %v655_v5 = vld [vmem:[#allocation12 + $0x10] sm:$0xff]  ;;  %v654_v6 = vld [vmem:[#allocation12 + $0x8] sm:$0xff]  ;;  %704 = vst.msk [vmem:[#allocation4 + $0x10] sm:$0xff] %vm701_vm1, %v2002_v13 }
 0x19f   : > { %675 = vmatpush.msra.mxu0 %v666_v58  ;;  %v653_v7 = vld [vmem:[#allocation12] sm:$0xff]  ;;  %v652_v8 = vld [vmem:[%s440_s11] sm:$0xff]  ;;  %705 = vst.msk [vmem:[#allocation4 + $0x18] sm:$0xff] %vm701_vm1, %v2002_v13 }
 0x1a0   : > { %v1631_v9 = vld [vmem:[%s2536_s6] ss:$0 sm:$0xff]  ;;  %706 = vst.msk [vmem:[#allocation5] sm:$0xff] %vm701_vm1, %v2003_v14 }
 0x1a1   : > { %676 = vmatpush.msra.mxu0 %v665_v59  ;;  %707 = vst.msk [vmem:[#allocation5 + $0x8] sm:$0xff] %vm701_vm1, %v2003_v14 }
 0x1a2   : > { %708 = vst.msk [vmem:[#allocation5 + $0x10] sm:$0xff] %vm701_vm1, %v2003_v14 }
 0x1a3   : > { %677 = vmatpush.msra.mxu0 %v664_v60  ;;  %709 = vst.msk [vmem:[#allocation5 + $0x18] sm:$0xff] %vm701_vm1, %v2003_v14 }
 0x1a4   : > { %711 = vst.msk [vmem:[#allocation6] sm:$0xff] %vm710_vm2, %v2003_v14 }
 0x1a5   : > { %678 = vmatpush.msra.mxu0 %v663_v61  ;;  %712 = vst.msk [vmem:[#allocation6 + $0x8] sm:$0xff] %vm710_vm2, %v2003_v14 }
 0x1a6   : > { %713 = vst.msk [vmem:[#allocation6 + $0x10] sm:$0xff] %vm710_vm2, %v2003_v14 }
 0x1a7   : > { %679 = vmatpush.msra.mxu0 %v662_v62  ;;  %714 = vst.msk [vmem:[#allocation6 + $0x18] sm:$0xff] %vm710_vm2, %v2003_v14 }
 0x1a9   : > { %680 = vmatpush.msra.mxu0 %v661_v63 }
 0x1ab   : > { %681 = vmatpush.msra.mxu0 %v660_v0 }
 0x1ad   : > { %682 = vmatpush.msra.mxu0 %v659_v1 }
 0x1af   : > { %683 = vmatpush.msra.mxu0 %v658_v2 }
 0x1b1   : > { %684 = vmatpush.msra.mxu0 %v657_v3 }
 0x1b3   : > { %685 = vmatpush.msra.mxu0 %v656_v4 }
 0x1b5   : > { %686 = vmatpush.msra.mxu0 %v655_v5 }
 0x1b7   : > { %687 = vmatpush.msra.mxu0 %v654_v6 }
 0x1b9   : > { %688 = vmatpush.msra.mxu0 %v653_v7 }
 0x1ba   : > { %689 = vmatmul.f32.vlgmr.msra.gmra.mxu0 %v652_v8 }
 0x237   : > { %v690_v10 = vpop.f32.mrf.mxu0 }
 0x238   : > { %v691_v11 = vadd.f32 %v1631_v9, %v690_v10 }
 0x23a   : > { %v2314_v12 = vmul.f32 0.17677669, %v691_v11 }
 0x23c   : > { %699 = vrot.lane.b32.xlu1 %v2314_v12, %s1999_s7  ;;  %695 = vrot.lane.b32.xlu0 %v2314_v12, %s2000_s13 }
 0x244   : > { %697 = vrot.lane.b32.xlu0 %v2314_v12, %s2001_s19 }
 0x2ae   : > { %v2331_v15 = vpop.permute.xlu1 %699  ;;  %v2333_v16 = vpop.permute.xlu0 %695 }
 0x2b6   : > { %v2335_v17 = vpop.permute.xlu0 %697 }
 0x2b7 LB: >> { %s1406_s11 = sshll.u32 %s1988_s3, 3  ;;  %vm836_vm3 = vcmask 64512   ;;  %v2004_v30 = vmov 0   ;;  %v832_v31 = vld [vmem:[#allocation4] sm:$0xff]  ;;  %v834_v35 = vld [vmem:[#allocation4 + $0x10] sm:$0xff]  ;;  %v833_v37 = vld [vmem:[#allocation4 + $0x8] sm:$0xff]  ;;  %s1988_s3 = sphi %s2337_s3, %s720_s3  }
 0x2b8   : >> { %s722_s25 = scalar_lea.vmem [#allocation2], %s1406_s11  ;;  %1633 = vset.pattern.permute.xlu0 %v2004_v30  ;;  %1632 = vset.pattern.permute.xlu2 %v2004_v30  ;;  %v835_v45 = vld [vmem:[#allocation4 + $0x18] sm:$0xff]  ;;  %s727_s24 = scalar_lea.vmem [#allocation3], %s1406_s11 }
 0x2b9   : >> { %v723_v18 = vld [vmem:[%s722_s25] sm:$0xff]  ;;  %v724_v20 = vld [vmem:[%s722_s25 + $0x10] sm:$0xff]  ;;  %1634 = vset.pattern.permute.xlu1 %v2004_v30  ;;  %s720_s3 = sadd.s32 1, %s1988_s3  }
 0x2ba   : >> { %v725_v19 = vld [vmem:[%s722_s25 + $0x20] sm:$0xff]  ;;  %1407 = vmatpush.xpose.msk.msra.mxu0 %vm710_vm2, %v723_v18  ;;  %v726_v21 = vld [vmem:[%s722_s25 + $0x30] sm:$0xff]  ;;  %1409 = vmatpush.xpose.msk.msra.mxu1 %vm710_vm2, %v724_v20  ;;  %p717_p6 = scmp.ge.s32.totalorder %s720_s3, 2  }
 0x2bb   : >> { %1411 = vmatpush.xpose.msk.msra.mxu2 %vm710_vm2, %v725_v19  ;;  %1413 = vmatpush.xpose.msk.msra.mxu3 %vm710_vm2, %v726_v21  ;;  %v730_v55 = vld [vmem:[%s727_s24 + $0x20] sm:$0xff]  ;;  %v731_v56 = vld [vmem:[%s727_s24 + $0x30] sm:$0xff]  ;;  %s2537_s2 = sld [smem:[#allocation27_spill]] (%p717_p6)  ;;  %s1225_s19 = sshll.u32 (%p717_p6), %s502_s9, 4  ;;  %s1226_s19 = int_to_ptr.vmem [resolvable:$true] %s1225_s19 }
 0x2bc   : >> { %v728_v57 = vld [vmem:[%s727_s24] sm:$0xff]  ;;  %v729_v58 = vld [vmem:[%s727_s24 + $0x10] sm:$0xff]  ;;  %s2538_s26 = sld [smem:[#allocation26_spill]] (%p717_p6)  ;;  %s1211_s11 = scalar_lea.sflag (%p717_p6), [#allocation9], %s438_s28 }
 0x2bd   : >> { %1408 = vmatmul.msk.f32.vlgmr.msra.gmra.mxu0 %vm710_vm2, %v2314_v12  ;;  %1410 = vmatmul.msk.f32.vlgmr.msra.gmra.mxu1 %vm710_vm2, %v2333_v16  ;;  %s2539_s10 = sld [smem:[#allocation42_spill]] (%p717_p6) }
 0x2be   : >> { %1412 = vmatmul.msk.f32.vlgmr.msra.gmra.mxu2 %vm710_vm2, %v2335_v17  ;;  %1414 = vmatmul.msk.f32.vlgmr.msra.gmra.mxu3 %vm710_vm2, %v2331_v15  ;;  %v1094_v17 = vld [vmem:[#allocation16 + $0x8] sm:$0xff] (%p717_p6)  ;;  %s2541_s13 = sld [smem:[#allocation41_spill]] (%p717_p6) }
 0x2bf   : >> { %1017 = vmatpush.msrb.mxu2 %v730_v55  ;;  %1040 = vmatpush.msrb.mxu3 %v731_v56 }
 0x2c0   : >> { %971 = vmatpush.msrb.mxu0 %v728_v57  ;;  %994 = vmatpush.msrb.mxu1 %v729_v58  ;;  %v2005_v57 = vmov (%p717_p6), 0   ;;  %v1104_v58 = vld [vmem:[#allocation16 + $0x58] sm:$0xff] (%p717_p6) }
 0x2c1   : > { %1170 = vmatpush.msra.mxu2 (%p717_p6), %v1104_v58  ;;  %s1424_s16 = sshll.u32 (%p717_p6), %s2537_s2, 1 }
 0x2c2   : > { %s1221_s12 = sadd.s32 (%p717_p6), %s2538_s26, %s1424_s16 }
 0x2c3   : > { %s1425_s5 = sshll.u32 (%p717_p6), %s1221_s12, 3  ;;  %s1862_s16 = scalar_lea.hbm (%p717_p6), %s2539_s10, 32 }
 0x2c4   : > { %s1223_s4 = scalar_lea.hbm (%p717_p6), %s2539_s10, %s1425_s5 }
 0x2c5   : > { %s1227_s3 = sshll.u32 (%p717_p6), %s1223_s4, 4  ;;  %s1228_s3 = int_to_ptr.hbm [resolvable:$true] %s1227_s3 }
 0x2c6   : > { %s1856_s25 = sshra.s32 (%p717_p6), %s1228_s3, 4  ;;  %s1857_s25 = int_to_ptr.hbm [resolvable:$true] %s1856_s25 }
 0x2c7   : > { %s1858_s24 = scalar_lea.hbm (%p717_p6), %s1857_s25, 8  ;;  %p1863_p0 = scmp.lt.s32.totalorder (%p717_p6), %s1857_s25, %s2539_s10 }
 0x2c8   : > { %p1859_p8 = scmp.ne.s32.totalorder (%p717_p6), %s1857_s25, %s1858_s24  ;;  %p1864_p1 = scmp.lt.s32.totalorder (%p717_p6), %s1862_s16, %s1858_s24 }
 0x2ca   : > { %p1860_p10 = pnand (%p717_p6), %p1859_p8, %p2219_p12  ;;  %p1865_p3 = por (%p717_p6), %p1864_p1, %p1863_p0 }
 0x2cc   : > { %p1861_p13 = pneg (%p717_p6), %p1860_p10 }
 0x2ce   : > { %p1866_p9 = pnand (%p717_p6), %p1865_p3, %p1861_p13 }
 0x33a   : >> { %v2357_v22 = vpop.f32.mrf.mxu0  ;;  %v2361_v24 = vpop.f32.mrf.mxu1 }
 0x33b   : >> { %v837_v23 = vsel %vm836_vm3, %v2357_v22, -inf  ;;  %v840_v27 = vsel %vm836_vm3, %v2361_v24, -inf }
 0x33c   : >> { %838 = vmax.xlane.f32.xlu1 %v837_v23 }
 0x341   : >> { %v2363_v25 = vpop.f32.mrf.mxu2  ;;  %v2369_v28 = vpop.f32.mrf.mxu3 }
 0x342   : >> { %v843_v26 = vsel %vm836_vm3, %v2363_v25, -inf  ;;  %v846_v29 = vsel %vm836_vm3, %v2369_v28, -inf }
 0x343   : >> { %844 = vmax.xlane.f32.xlu0 %v843_v26 }
 0x344   : >> { %841 = vmax.xlane.f32.xlu1 %v840_v27  ;;  %v900_v27 = vld [vmem:[#allocation5 + $0x18] sm:$0xff] }
 0x34b   : >> { %847 = vmax.xlane.f32.xlu0 %v846_v29 }
 0x3af   : >> { %v839_v32 = vpop.xlane.xlu1 %838 }
 0x3b0   : >> { %v849_v33 = vmax.f32 %v832_v31, %v839_v32 }
 0x3b2   : >> { %1053 = vst.msk [vmem:[#allocation4] sm:$0xff] %vm701_vm1, %v849_v33  ;;  %867 = vperm.xlu0 %1633, %v849_v33   ;;  %v853_v34 = vsub.f32 %v832_v31, %v849_v33  ;;  %v927_v31 = vld [vmem:[#allocation6 + $0x10] sm:$0xff]  ;;  %v897_v33 = vld [vmem:[#allocation5] sm:$0xff] }
 0x3b4   : >> { %v857_v39 = vmul.f32 1.442695, %v853_v34 }
 0x3b6   : >> { %v845_v36 = vpop.xlane.xlu0 %844  ;;  %1635 = vpow2.f32 %v857_v39 }
 0x3b7   : >> { %v851_v38 = vmax.f32 %v834_v35, %v845_v36  ;;  %v842_v40 = vpop.xlane.xlu1 %841 }
 0x3b8   : >> { %v850_v42 = vmax.f32 %v833_v37, %v842_v40 }
 0x3b9   : >> { %v855_v41 = vsub.f32 %v834_v35, %v851_v38  ;;  %1055 = vst.msk [vmem:[#allocation4 + $0x10] sm:$0xff] %vm701_vm1, %v851_v38  ;;  %877 = vperm.xlu2 %1632, %v851_v38   ;;  %v928_v38 = vld [vmem:[#allocation6 + $0x18] sm:$0xff] }
 0x3ba   : >> { %1054 = vst.msk [vmem:[#allocation4 + $0x8] sm:$0xff] %vm701_vm1, %v850_v42  ;;  %872 = vperm.xlu1 %1634, %v850_v42   ;;  %v854_v44 = vsub.f32 %v833_v37, %v850_v42  ;;  %v925_v42 = vld [vmem:[#allocation6] sm:$0xff] }
 0x3bb   : >> { %v861_v43 = vmul.f32 1.442695, %v855_v41  ;;  %v898_v41 = vld [vmem:[#allocation5 + $0x8] sm:$0xff] }
 0x3bc   : >> { %v859_v48 = vmul.f32 1.442695, %v854_v44  ;;  %v2377_v49 = vpop.eup %1635 }
 0x3bd   : >> { %1637 = vpow2.f32 %v861_v43  ;;  %v901_v36 = vmul.f32 %v2377_v49, %v897_v33  ;;  %v1653_v33 = vld [vmem:[%s2541_s13] ss:$0 sm:$0xff] (%p717_p6) }
 0x3be   : >> { %v848_v46 = vpop.xlane.xlu0 %847  ;;  %1639 = vpow2.f32 %v859_v48 }
 0x3bf   : >> { %v852_v47 = vmax.f32 %v835_v45, %v848_v46 }
 0x3c1   : >> { %1056 = vst.msk [vmem:[#allocation4 + $0x18] sm:$0xff] %vm701_vm1, %v852_v47  ;;  %882 = vperm.xlu2 %1632, %v852_v47   ;;  %v856_v50 = vsub.f32 %v835_v45, %v852_v47 }
 0x3c2   : >> { %931 = vperm.xlu1 %1634, %v2377_v49  }
 0x3c3   : >> { %v1638_v51 = vpop.eup %1637  ;;  %v863_v52 = vmul.f32 1.442695, %v856_v50 }
 0x3c4   : >> { %941 = vperm.xlu0 %1633, %v1638_v51   ;;  %v2380_v53 = vpop.eup %1639 }
 0x3c5   : >> { %1641 = vpow2.f32 %v863_v52  ;;  %v902_v45 = vmul.f32 %v2380_v53, %v898_v41 }
 0x3ca   : >> { %936 = vperm.xlu1 %1634, %v2380_v53  }
 0x3cb   : >> { %v1642_v54 = vpop.eup %1641 }
 0x3cc   : > { %1651 = vset.pattern.permute.xlu0 (%p717_p6), %v2005_v57 }
 0x3d2   : >> { %946 = vperm.xlu1 %1634, %v1642_v54  }
 0x3da   : > { %1652 = vset.pattern.permute.xlu1 (%p717_p6), %v2005_v57 }
 0x413   : >> { %v878_v59 = vpop.permute.xlu2 %877 }
 0x414   : >> { %v887_v60 = vsub.f32 %v2363_v25, %v878_v59  ;;  %v1096_v59 = vld [vmem:[#allocation16 + $0x18] sm:$0xff] (%p717_p6) }
 0x415   : > { %1124 = vmatpush.msra.mxu0 (%p717_p6), %v1096_v59 }
 0x416   : >> { %v893_v61 = vmul.f32 1.442695, %v887_v60  ;;  %v1103_v60 = vld [vmem:[#allocation16 + $0x50] sm:$0xff] (%p717_p6) }
 0x417   : > { %1171 = vmatpush.msra.mxu2 (%p717_p6), %v1103_v60 }
 0x418   : >> { %1643 = vpow2.f32 %v893_v61  ;;  %v1095_v61 = vld [vmem:[#allocation16 + $0x10] sm:$0xff] (%p717_p6) }
 0x419   : > { %1125 = vmatpush.msra.mxu0 (%p717_p6), %v1095_v61 }
 0x41b   : >> { %v883_v62 = vpop.permute.xlu2 %882  ;;  %1126 = vmatpush.msra.mxu0 (%p717_p6), %v1094_v17 }
 0x41c   : >> { %v888_v63 = vsub.f32 %v2369_v28, %v883_v62  ;;  %v904_v28 = vmul.f32 %v1642_v54, %v900_v27  ;;  %v1102_v62 = vld [vmem:[#allocation16 + $0x48] sm:$0xff] (%p717_p6) }
 0x41d   : > { %1172 = vmatpush.msra.mxu2 (%p717_p6), %v1102_v62 }
 0x41e   : >> { %v1644_v0 = vpop.eup %1643  ;;  %v895_v1 = vmul.f32 1.442695, %v888_v63 }
 0x41f   : >> { %1417 = vmatmul.msk.f32.vlgmr.msrb.gmra.mxu2 %vm836_vm3, %v1644_v0  ;;  %v911_v2 = vsel %vm836_vm3, %v1644_v0, 0.0 }
 0x420   : >> { %1645 = vpow2.f32 %v895_v1  ;;  %912 = vadd.xlane.f32.xlu0 %v911_v2  ;;  %v1101_v2 = vld [vmem:[#allocation16 + $0x40] sm:$0xff] (%p717_p6) }
 0x421   : > { %1173 = vmatpush.msra.mxu2 (%p717_p6), %v1101_v2 }
 0x424   : >> { %v868_v3 = vpop.permute.xlu0 %867 }
 0x425   : >> { %v885_v5 = vsub.f32 %v2357_v22, %v868_v3  ;;  %v899_v22 = vld [vmem:[#allocation5 + $0x10] sm:$0xff] }
 0x426   : >> { %v1646_v4 = vpop.eup %1645  ;;  %v903_v23 = vmul.f32 %v1638_v51, %v899_v22  ;;  %v926_v51 = vld [vmem:[#allocation6 + $0x8] sm:$0xff]  ;;  %v1093_v3 = vld [vmem:[#allocation16] sm:$0xff] (%p717_p6) }
 0x427   : >> { %1418 = vmatmul.msk.f32.vlgmr.msrb.gmra.mxu3 %vm836_vm3, %v1646_v4  ;;  %v914_v6 = vsel %vm836_vm3, %v1646_v4, 0.0  ;;  %v889_v7 = vmul.f32 1.442695, %v885_v5  ;;  %v1100_v4 = vld [vmem:[#allocation16 + $0x38] sm:$0xff] (%p717_p6)  ;;  %1127 = vmatpush.msra.mxu0 (%p717_p6), %v1093_v3 }
 0x428   : >> { %915 = vadd.xlane.f32.xlu1 %v914_v6  ;;  %v1108_v5 = vld [vmem:[#allocation16 + $0x78] sm:$0xff] (%p717_p6)  ;;  %1147 = vmatpush.msra.mxu1 (%p717_p6), %v1100_v4  ;;  %v1099_v6 = vld [vmem:[#allocation16 + $0x30] sm:$0xff] (%p717_p6) }
 0x429   : >> { %1647 = vpow2.f32 %v889_v7  ;;  %1193 = vmatpush.msra.mxu3 (%p717_p6), %v1108_v5  ;;  %v1107_v7 = vld [vmem:[#allocation16 + $0x70] sm:$0xff] (%p717_p6) }
 0x42a   : > { %1148 = vmatpush.msra.mxu1 (%p717_p6), %v1099_v6 }
 0x42b   : > { %1194 = vmatpush.msra.mxu3 (%p717_p6), %v1107_v7 }
 0x42c   : >> { %v873_v8 = vpop.permute.xlu1 %872 }
 0x42d   : >> { %v886_v9 = vsub.f32 %v2361_v24, %v873_v8  ;;  %v1098_v8 = vld [vmem:[#allocation16 + $0x28] sm:$0xff] (%p717_p6) }
 0x42e   : > { %1149 = vmatpush.msra.mxu1 (%p717_p6), %v1098_v8 }
 0x42f   : >> { %v1648_v10 = vpop.eup %1647  ;;  %v891_v11 = vmul.f32 1.442695, %v886_v9  ;;  %v1106_v9 = vld [vmem:[#allocation16 + $0x68] sm:$0xff] (%p717_p6) }
 0x430   : >> { %1415 = vmatmul.msk.f32.vlgmr.msrb.gmra.mxu0 %vm836_vm3, %v1648_v10  ;;  %v905_v13 = vsel %vm836_vm3, %v1648_v10, 0.0  ;;  %1195 = vmatpush.msra.mxu3 (%p717_p6), %v1106_v9  ;;  %v1097_v10 = vld [vmem:[#allocation16 + $0x20] sm:$0xff] (%p717_p6) }
 0x431   : >> { %1649 = vpow2.f32 %v891_v11  ;;  %906 = vadd.xlane.f32.xlu2 %v905_v13  ;;  %v1105_v11 = vld [vmem:[#allocation16 + $0x60] sm:$0xff] (%p717_p6)  ;;  %1150 = vmatpush.msra.mxu1 (%p717_p6), %v1097_v10 }
 0x432   : > { %1196 = vmatpush.msra.mxu3 (%p717_p6), %v1105_v11 }
 0x434   : >> { %v932_v19 = vpop.permute.xlu1 %931 }
 0x435   : >> { %v949_v46 = vmul.f32 %v932_v19, %v925_v42 }
 0x436   : >> { %v942_v21 = vpop.permute.xlu0 %941 }
 0x437   : >> { %v1650_v14 = vpop.eup %1649  ;;  %v951_v32 = vmul.f32 %v942_v21, %v927_v31 }
 0x438   : >> { %1416 = vmatmul.msk.f32.vlgmr.msrb.gmra.mxu1 %vm836_vm3, %v1650_v14  ;;  %v908_v18 = vsel %vm836_vm3, %v1650_v14, 0.0 }
 0x439   : >> { %909 = vadd.xlane.f32.xlu2 %v908_v18 }
 0x43c   : >> { %v937_v20 = vpop.permute.xlu1 %936 }
 0x43d   : >> { %v950_v52 = vmul.f32 %v937_v20, %v926_v51 }
 0x444   : >> { %v947_v24 = vpop.permute.xlu1 %946 }
 0x445   : >> { %v952_v40 = vmul.f32 %v947_v24, %v928_v38 }
 0x493   : >> { %v913_v25 = vpop.xlane.xlu0 %912 }
 0x494   : >> { %v919_v26 = vadd.f32 %v913_v25, %v903_v23 }
 0x496   : >> { %923 = vst.msk [vmem:[#allocation5 + $0x10] sm:$0xff] %vm701_vm1, %v919_v26 }
 0x49b   : >> { %v916_v29 = vpop.xlane.xlu1 %915 }
 0x49c   : >> { %v920_v30 = vadd.f32 %v916_v29, %v904_v28 }
 0x49d   : > { %v1063_v53 = vld [vmem:[#allocation5 + $0x10] sm:$0xff] (%p717_p6) }
 0x49e   : >> { %924 = vst.msk [vmem:[#allocation5 + $0x18] sm:$0xff] %vm701_vm1, %v920_v30  ;;  %1654 = vrcp.f32 (%p717_p6), %v1063_v53 }
 0x4a2   : >> { %v1019_v34 = vpop.f32.mrf.mxu2 }
 0x4a3   : >> { %v1047_v35 = vadd.f32 %v1019_v34, %v951_v32 }
 0x4a4   : >> { %v907_v37 = vpop.xlane.xlu2 %906  ;;  %v1655_v1 = vpop.eup (%p717_p6), %1654 }
 0x4a5   : >> { %1051 = vst.msk [vmem:[#allocation6 + $0x10] sm:$0xff] %vm710_vm2, %v1047_v35  ;;  %v917_v39 = vadd.f32 %v907_v37, %v901_v36  ;;  %v1064_v63 = vld [vmem:[#allocation5 + $0x18] sm:$0xff] (%p717_p6)  ;;  %1081 = vperm.xlu0 (%p717_p6), %1651, %v1655_v1  }
 0x4a7   : >> { %921 = vst.msk [vmem:[#allocation5] sm:$0xff] %vm701_vm1, %v917_v39 }
 0x4aa   : >> { %v1042_v43 = vpop.f32.mrf.mxu3 }
 0x4ab   : >> { %v1048_v44 = vadd.f32 %v1042_v43, %v952_v40 }
 0x4ac   : >> { %v910_v47 = vpop.xlane.xlu2 %909  ;;  %v1059_v13 = vld [vmem:[#allocation6 + $0x10] sm:$0xff] (%p717_p6) }
 0x4ad   : >> { %1052 = vst.msk [vmem:[#allocation6 + $0x18] sm:$0xff] %vm710_vm2, %v1048_v44  ;;  %v918_v48 = vadd.f32 %v910_v47, %v902_v45  ;;  %v973_v49 = vpop.f32.mrf.mxu0 }
 0x4ae   : >> { %v1045_v50 = vadd.f32 %v973_v49, %v949_v46  ;;  %v1061_v56 = vld [vmem:[#allocation5] sm:$0xff] (%p717_p6) }
 0x4af   : >> { %922 = vst.msk [vmem:[#allocation5 + $0x8] sm:$0xff] %vm701_vm1, %v918_v48  ;;  %1656 = vrcp.f32 (%p717_p6), %v1061_v56 }
 0x4b0   : >> { %1049 = vst.msk [vmem:[#allocation6] sm:$0xff] %vm710_vm2, %v1045_v50  ;;  %1658 = vrcp.f32 (%p717_p6), %v1064_v63 }
 0x4b4   : > { %719 = sbr.rel (!%p717_p6) target bundleno = 695 (0x2b7), region = 147  ;;  %v1060_v22 = vld [vmem:[#allocation6 + $0x18] sm:$0xff] (%p717_p6) }
 0x4b5   : >> { %v996_v54 = vpop.f32.mrf.mxu1  ;;  %v1657_v12 = vpop.eup (%p717_p6), %1656 }
 0x4b6   : >> { %v1046_v55 = vadd.f32 %v996_v54, %v950_v52  ;;  %v1062_v0 = vld [vmem:[#allocation5 + $0x8] sm:$0xff] (%p717_p6)  ;;  %1071 = vperm.xlu1 (%p717_p6), %1652, %v1657_v12   ;;  %v1659_v15 = vpop.eup (%p717_p6), %1658 }
 0x4b7   : > { %1660 = vrcp.f32 (%p717_p6), %v1062_v0  ;;  %1086 = vperm.xlu0 (%p717_p6), %1651, %v1659_v15   ;;  %v1057_v14 = vld [vmem:[#allocation6] sm:$0xff] (%p717_p6) }
 0x4b8   : >> { %1050 = vst.msk [vmem:[#allocation6 + $0x8] sm:$0xff] %vm710_vm2, %v1046_v55 }
 0x4bd   : > { %v1661_v16 = vpop.eup %1660 }
 0x4be   : > { %1076 = vperm.xlu1 %1652, %v1661_v16  }
 0x4bf   : > { %v1058_v23 = vld [vmem:[#allocation6 + $0x8] sm:$0xff] }
 0x517   : > { %v1082_v18 = vpop.permute.xlu0 %1081 }
 0x518   : > { %v1091_v19 = vmul.f32 %v1082_v18, %v1059_v13 }
 0x51a   : > { %1421 = vmatmul.msk.f32.vlgmr.msra.gmra.mxu2 %vm710_vm2, %v1091_v19 }
 0x528   : > { %v1072_v20 = vpop.permute.xlu1 %1071 }
 0x529   : > { %v1089_v21 = vmul.f32 %v1072_v20, %v1057_v14  ;;  %v1087_v24 = vpop.permute.xlu0 %1086 }
 0x52a   : > { %v1092_v25 = vmul.f32 %v1087_v24, %v1060_v22 }
 0x52b   : > { %1419 = vmatmul.msk.f32.vlgmr.msra.gmra.mxu0 %vm710_vm2, %v1089_v21 }
 0x52c   : > { %1422 = vmatmul.msk.f32.vlgmr.msra.gmra.mxu3 %vm710_vm2, %v1092_v25 }
 0x530   : > { %v1077_v26 = vpop.permute.xlu1 %1076 }
 0x531   : > { %v1090_v27 = vmul.f32 %v1077_v26, %v1058_v23 }
 0x533   : > { %1420 = vmatmul.msk.f32.vlgmr.msra.gmra.mxu1 %vm710_vm2, %v1090_v27 }
 0x59d   : > { %v1175_v31 = vpop.f32.mrf.mxu2 }
 0x5a8   : > { %v1129_v28 = vpop.f32.mrf.mxu0 }
 0x5af   : > { %v1198_v34 = vpop.f32.mrf.mxu3 }
 0x5b0   : > { %v1152_v29 = vpop.f32.mrf.mxu1 }
 0x5b1   : > { %v1201_v30 = vadd.f32 %v1152_v29, %v1129_v28 }
 0x5b3   : > { %v1202_v32 = vadd.f32 %v1201_v30, %v1175_v31 }
 0x5b5   : > { %v1203_v35 = vadd.f32 %v1202_v32, %v1198_v34 }
 0x5b7   : > { %v1208_v36 = vadd.f32 %v1653_v33, %v1203_v35 }
 0x5b9   : > { %1209 = vst [vmem:[%s502_s9] sm:$0xff] %v1208_v36 }
 0x5ba   : > { %1869 = shalt.err (!%p1866_p9)
}
 0x5bb   : > { %1481 = dma.vmem_to_hbm [thread:$0]  (%p2219_p12), %s1226_s19, 128, %s1228_s3, %s1211_s11  }
 0x5bc PF: > { %s2542_s28 = sld [smem:[#allocation25_spill]]  ;;  %p1516_p11 = scmp.ge.s32.totalorder %s1984_s23, 2 }
 0x5be   : > { %p1504_p2 = pnand %p1516_p11, %p2223_p7 }
 0x5c0   : > { %p1505_p4 = pneg %p1504_p2 }
 0x5c2   : > { %s1239_s9 = sand.u32 1, %s2542_s28  }
 0x5c3   : > { %s1240_s20 = scalar_lea.sflag [#allocation9], %s1239_s9 }
 0x5c4   : > { %1939 = dma.done.wait (%p1505_p4), %s1240_s20, 128  }
 0x5c5   : > { %1941 = vsyncadd (%p1505_p4), %s1240_s20, 4294967168  ;;  %s31_s23 = sadd.s32 1, %s1984_s23   ;;  %s2544_s29 = sld [smem:[#allocation28_spill]] }
 0x5c6   : > { %p28_p5 = scmp.ge.s32.totalorder %s31_s23, 6   ;;  %s2545_s4 = sld [smem:[#allocation30_spill]] }
 0x5c7   : > { %s2546_s13 = smov %s1948_s14  ;;  %s2547_s14 = smov %s1952_s15 }
 0x5c8   : > { %s2548_s15 = smov %s2236_s0  ;;  %s2549_s16 = smov %s1960_s17 }
 0x5c9   : > { %s2550_s17 = smov %s1964_s18  ;;  %s2551_s18 = smov %s2233_s27 }
 0x5ca   : > { %s2552_s19 = smov %s1976_s21  ;;  %s2553_s20 = smov %s1980_s22 }
 0x5cb   : > { %s2554_s21 = smov %s2544_s29  ;;  %30 = sbr.rel (!%p28_p5) target bundleno = 24 (0x18), region = 158 }
 0x5cc   : > { %s2555_s22 = smov %s2545_s4 }
 0x5d0   :  { %1246 = vsyncpa [#allocation8], 1 }
 0x5d1   :  { %1248 = vsyncpa [#allocation8 + $0x1], 1 }
 0x5d2   :  { %1249 = vsyncpa [#allocation11], 1 }
 0x5d3   :  { %1251 = vsyncpa [#allocation11 + $0x1], 1 }
 0x5d4   :  { %1252 = vsyncpa [#allocation14], 1 }
 0x5d5   :  { %1253 = vsyncpa [#allocation17], 1 }
 0x5d6   :  { %1254 = vsyncpa [#allocation9], 1 }
 0x5d7   :  { %1256 = vsyncpa [#allocation9 + $0x1], 1 }

// kernel: tpu_custom_call.1
= control target key start
LH: loop header
LB: loop body
LE: loop exit
PB: predicated region body
PF: predicated region fallthrough
CT: control target
= control target key end

     0   :  { %s2475_s0 = inlined_call_operand.hbm [shape: f32[2,16,128], index: 0, kind: input, shape index: {}]   ;;  %s2476_s1 = inlined_call_operand.hbm [shape: f32[2,16,128], index: 1, kind: input, shape index: {}]   ;;  %s2477_s2 = inlined_call_operand.hbm [shape: f32[128,128], index: 2, kind: input, shape index: {}]   ;;  %s2478_s3 = inlined_call_operand.hbm [shape: f32[128,128], index: 3, kind: input, shape index: {}]   ;;  %s2479_s4 = inlined_call_operand.hbm [shape: f32[128,128], index: 4, kind: input, shape index: {}]   ;;  %s2480_s5 = inlined_call_operand.vmem [shape: f32[1,128], index: 5, kind: input, shape index: {}]   ;;  %s2481_s6 = inlined_call_operand.vmem [shape: f32[1,128], index: 6, kind: input, shape index: {}]   ;;  %s2482_s7 = inlined_call_operand.vmem [shape: f32[1,128], index: 7, kind: input, shape index: {}]   ;;  %s2483_s8 = inlined_call_operand.hbm [shape: f32[4,32,128], index: 8, kind: input, shape index: {}]   ;;  %s2484_s9 = inlined_call_operand.vmem [shape: f32[1,128], index: 9, kind: input, shape index: {}]   ;;  %s2485_s10 = inlined_call_operand.hbm [shape: f32[2,16,128], index: 10, kind: output, shape index: {}]  }
   0x1   :  { %2496 = sst [smem:[#allocation33_spill]] %s2475_s0 }
   0x2   :  { %2497 = sst [smem:[#allocation34_spill]] %s2477_s2 }
   0x3   :  { %2498 = sst [smem:[#allocation35_spill]] %s2478_s3 }
   0x4   :  { %2499 = sst [smem:[#allocation36_spill]] %s2479_s4 }
   0x5   :  { %2500 = sst [smem:[#allocation37_spill]] %s2480_s5 }
   0x6   :  { %2501 = sst [smem:[#allocation38_spill]] %s2481_s6 }
   0x7   :  { %2502 = sst [smem:[#allocation39_spill]] %s2482_s7 }
   0x8   :  { %2503 = sst [smem:[#allocation40_spill]] %s2483_s8 }
   0x9   :  { %2504 = sst [smem:[#allocation41_spill]] %s2484_s9 }
   0xa   :  { %2505 = sst [smem:[#allocation42_spill]] %s2485_s10 }
   0xb   :  { %15 = vsyncpa [#allocation8], 0 }
   0xc   :  { %17 = vsyncpa [#allocation8 + $0x1], 0 }
   0xd   :  { %18 = vsyncpa [#allocation11], 0 }
   0xe   :  { %20 = vsyncpa [#allocation11 + $0x1], 0 }
   0xf   :  { %21 = vsyncpa [#allocation14], 0 }
  0x10   :  { %22 = vsyncpa [#allocation17], 0 }
  0x11   :  { %23 = vsyncpa [#allocation9], 0 }
  0x12   :  { %25 = vsyncpa [#allocation9 + $0x1], 0  ;;  %s2061_s13 = smov 0   ;;  %s2063_s14 = smov 0  }
  0x13   :  { %s2065_s15 = smov 0   ;;  %s2067_s16 = smov 0  }
  0x14   :  { %s2069_s17 = smov 0   ;;  %s2071_s18 = smov 0  }
  0x15   :  { %s2073_s19 = smov 0   ;;  %s2075_s20 = smov 0  }
  0x16   :  { %s2077_s21 = smov 0   ;;  %s2079_s22 = smov 0  }
  0x17   :  { %s2081_s23 = smov 0  }
  0x18 LB: > { %2506 = sst [smem:[#allocation25_spill]] %s1944_s13  ;;  %s2117_s24 = sadd.s32 4294967295, %s1984_s23   ;;  %s1984_s23 = sphi %s2081_s23, %s31_s23   ;;  %s1980_s22 = sphi %s2079_s22, %s2555_s22   ;;  %s1976_s21 = sphi %s2077_s21, %s2554_s21   ;;  %s1972_s20 = sphi %s2075_s20, %s2553_s20   ;;  %s1968_s19 = sphi %s2073_s19, %s2552_s19   ;;  %s1964_s18 = sphi %s2071_s18, %s2551_s18   ;;  %s1960_s17 = sphi %s2069_s17, %s2550_s17   ;;  %s1956_s16 = sphi %s2067_s16, %s2549_s16   ;;  %s1952_s15 = sphi %s2065_s15, %s2548_s15   ;;  %s1948_s14 = sphi %s2063_s14, %s2547_s14   ;;  %s1944_s13 = sphi %s2061_s13, %s2546_s13  }
  0x19   : > { %2507 = sst [smem:[#allocation26_spill]] %s1968_s19  ;;  %p1385_p0 = scmp.ge.s32.totalorder %s1984_s23, 1 }
  0x1a   : > { %2508 = sst [smem:[#allocation27_spill]] %s1972_s20  ;;  %p2487_p1 = scmp.eq.s32.totalorder %s2117_s24, 0 }
  0x1b   : > { %p298_p2 = scmp.lt.s32.totalorder %s1984_s23, 5  ;;  %s2509_s2 = sld [smem:[#allocation34_spill]] }
  0x1c   : > { %s1990_s29 = smov [#allocation12]   ;;  %s2512_s3 = sld [smem:[#allocation35_spill]] }
  0x1d   : > { %p2125_p3 = pnand %p1385_p0, %p298_p2  ;;  %s311_s30 = sshll.u32 %s1990_s29, 4  ;;  %s312_s30 = int_to_ptr.vmem [resolvable:$true] %s311_s30 }
  0x1e   : > { %s1991_s26 = smov 128   ;;  %s1993_s29 = smov [#allocation13]  }
  0x1f   : > { %p1483_p4 = pneg %p2125_p3  ;;  %s325_s10 = sshll.u32 %s1993_s29, 4  ;;  %s326_s10 = int_to_ptr.vmem [resolvable:$true] %s325_s10 }
  0x20   : > { %s2513_s4 = sld [smem:[#allocation36_spill]]  ;;  %s1994_s5 = smov [#allocation15]  }
  0x21   : > { %s309_s27 = sshll.u32 %s2509_s2, 4  ;;  %p2133_p5 = pnand %p1483_p4, %p2487_p1  ;;  %s310_s27 = int_to_ptr.hbm [resolvable:$true] %s309_s27 }
  0x22   : > { %s323_s25 = sshll.u32 %s2512_s3, 4  ;;  %s1992_s2 = smov 8   ;;  %s324_s25 = int_to_ptr.hbm [resolvable:$true] %s323_s25 }
  0x23   : > { %1486 = dma.hbm_to_vmem [thread:$0]  (!%p2133_p5), %s310_s27, 2048, %s312_s30, [#allocation11], %s1991_s26, %s1991_s26, %s1992_s2  }
  0x24   : > { %1489 = dma.hbm_to_vmem [thread:$0]  (!%p2133_p5), %s324_s25, 2048, %s326_s10, [#allocation14], %s1991_s26, %s1991_s26, %s1992_s2  }
  0x25   : > { %s2514_s8 = sld [smem:[#allocation40_spill]]  ;;  %s339_s20 = sshll.u32 %s1994_s5, 4  ;;  %s340_s20 = int_to_ptr.vmem [resolvable:$true] %s339_s20 }
  0x26   : > { %s337_s9 = sshll.u32 %s2513_s4, 4  ;;  %s1995_s29 = smov [#allocation16]   ;;  %s338_s9 = int_to_ptr.hbm [resolvable:$true] %s337_s9 }
  0x27   : > { %1492 = dma.hbm_to_vmem [thread:$0]  (!%p2133_p5), %s338_s9, 2048, %s340_s20, [#allocation14], %s1991_s26, %s1991_s26, %s1992_s2  }
  0x28   : > { %s362_s3 = sshll.u32 %s1995_s29, 4  ;;  %s50_s10 = sadd.s32 1, %s1964_s18  ;;  %s363_s3 = int_to_ptr.vmem [resolvable:$true] %s362_s3 }
  0x29   : > { %p57_p6 = scmp.ne.s32.totalorder %s1964_s18, %s1960_s17  ;;  %p58_p7 = scmp.eq.s32.totalorder %s1984_s23, 0 }
  0x2a   : > { %p63_p8 = scmp.ne.s32.totalorder %s1960_s17, %s1956_s16  ;;  %p1511_p9 = scmp.lt.s32.totalorder %s1984_s23, 4 }
  0x2b   : > { %s360_s12 = sshll.u32 %s2514_s8, 4  ;;  %s379_s25 = sand.u32 1, %s1964_s18   ;;  %s361_s12 = int_to_ptr.hbm [resolvable:$true] %s360_s12 }
  0x2c   : > { %1495 = dma.hbm_to_vmem [thread:$0]  (!%p2133_p5), %s361_s12, 2048, %s363_s3, [#allocation17], %s1991_s26, %s1991_s26, %s1992_s2  }
  0x2d   : > { %p59_p10 = por %p58_p7, %p57_p6  ;;  %p2178_p11 = por %p2487_p1, %p63_p8 }
  0x2e   : > { %s1391_s11 = sshll.u32 %s379_s25, 4  ;;  %s1428_s3 = sshll.u32 %s1980_s22, 4 }
  0x2f   : > { %s2516_s0 = sld [smem:[#allocation33_spill]]  ;;  %s383_s12 = scalar_lea.vmem [#allocation7], %s1391_s11 }
  0x30   : > { %s391_s5 = sshll.u32 %s383_s12, 4  ;;  %p1497_p12 = pnand %p1511_p9, %p59_p10  ;;  %s392_s5 = int_to_ptr.vmem [resolvable:$true] %s391_s5 }
  0x31   : > { %s380_s29 = scalar_lea.sflag [#allocation8], %s379_s25  ;;  %s1384_s27 = sadd.s32 4294967294, %s1984_s23  }
  0x32   : > { %s40_s30 = sadd.s32 1, %s1976_s21  ;;  %s78_s11 = sadd.s32 1, %s1952_s15 }
  0x33   : > { %p41_p13 = scmp.ge.s32.totalorder %s40_s30, 2  ;;  %p85_p0 = scmp.ne.s32.totalorder %s1952_s15, %s1948_s14 }
  0x34   : > { %p91_p2 = scmp.ne.s32.totalorder %s1948_s14, %s1944_s13  ;;  %p285_p8 = scmp.eq.s32.totalorder %s2117_s24, 3 }
  0x35   : > { %s388_s16 = scalar_lea.hbm %s2516_s0, %s1428_s3  ;;  %s43_s3 = sadd.s32 1, %s1980_s22 }
  0x36   : > { %s389_s20 = sshll.u32 %s388_s16, 4  ;;  %s2557_s30 = smov (%p41_p13, %s40_s30), 0  ;;  %s390_s20 = int_to_ptr.hbm [resolvable:$true] %s389_s20 }
  0x37   : > { %1499 = dma.hbm_to_vmem [thread:$0]  (!%p1497_p12), %s390_s20, 256, %s392_s5, %s380_s29, %s1991_s26, %s1991_s26, %s1992_s2  }
  0x38   : > { %2517 = sst [smem:[#allocation28_spill]] %s2557_s30  ;;  %s2559_s3 = smov (!%p41_p13, %s43_s3), %s1980_s22 }
  0x39   : > { %s74_s25 = ssub.s32 %s1976_s21, %s2557_s30  ;;  %p2206_p4 = por %p85_p0, %p58_p7 }
  0x3a   : > { %p45_p5 = scmp.ge.s32.totalorder %s2559_s3, 2  ;;  %p2212_p6 = por %p91_p2, %p2487_p1 }
  0x3b   : > { %p291_p10 = scmp.eq.s32.totalorder %s1384_s27, 3  ;;  %p2219_p12 = por %p285_p8, %p85_p0 }
  0x3c   : > { %s2519_s26 = scalar_select %p2212_p6, 1, 0 }
  0x3d   : > { %s2561_s3 = smov (%p45_p5, %s2559_s3), 0  ;;  %p2223_p7 = por %p291_p10, %p91_p2 }
  0x3e   : > { %2520 = sst [smem:[#allocation29_spill]] %s2519_s26  ;;  %s47_s5 = ssub.s32 %s1980_s22, %s2561_s3 }
  0x3f   : > { %2521 = sst [smem:[#allocation30_spill]] %s2561_s3  ;;  %s401_s20 = sand.u32 1, %s1984_s23  }
  0x40   : > { %s2522_s16 = scalar_select %p2219_p12, 1, 0 }
  0x41   : > { %s2524_s12 = scalar_select %p2223_p7, 1, 0 }
  0x42   : > { %2523 = sst [smem:[#allocation31_spill]] %s2522_s16  ;;  %p48_p13 = scmp.eq.s32.totalorder %s47_s5, 0 }
  0x43   : > { %2525 = sst [smem:[#allocation32_spill]] %s2524_s12  ;;  %s75_s29 = sor.u32 %s74_s25, %s47_s5 }
  0x44   : > { %p76_p1 = scmp.eq.s32.totalorder %s75_s29, 0  ;;  %s403_s4 = sand.u32 1, %s1952_s15  }
  0x45   : > { %s2233_s27 = scalar_select %p48_p13, %s1964_s18, %s50_s10  }
  0x46   : > { %s2236_s0 = scalar_select %p76_p1, %s1952_s15, %s78_s11  }
  0x47   : > { %s1395_s8 = sshll.u32 %s1980_s22, 1  ;;  %s1394_s30 = sshll.u32 %s403_s4, 3 }
  0x48   : > { %s409_s13 = sadd.s32 %s1976_s21, %s1395_s8  ;;  %s405_s12 = scalar_lea.vmem [#allocation10], %s1394_s30 }
  0x49   : > { %s1396_s16 = sshll.u32 %s409_s13, 3  ;;  %s415_s19 = sshll.u32 %s405_s12, 4  ;;  %s416_s19 = int_to_ptr.vmem [resolvable:$true] %s415_s19 }
  0x4a   : > { %s411_s3 = scalar_lea.hbm %s2476_s1, %s1396_s16  ;;  %p1500_p0 = pnand %p1511_p9, %p2206_p4 }
  0x4b   : > { %s413_s26 = sshll.u32 %s411_s3, 4  ;;  %s402_s10 = scalar_lea.sflag [#allocation11], %s401_s20  ;;  %s414_s26 = int_to_ptr.hbm [resolvable:$true] %s413_s26 }
  0x4c   : > { %1502 = dma.hbm_to_vmem [thread:$0]  (!%p1500_p0), %s414_s26, 128, %s416_s19, %s402_s10  }
  0x4d   : > { %424 = sbr.rel (%p2125_p3) target bundleno = 1468 (0x5bc), region = 60  ;;  %s426_s4 = sand.u32 (!%p2125_p3), 1, %s1960_s17  }
  0x4e   : > { %s2251_s8 = sshll.u32 (!%p2125_p3), %s426_s4, 4  ;;  %s427_s6 = scalar_lea.sflag (!%p2125_p3), [#allocation8], %s426_s4 }
  0x4f   : > { %s430_s7 = scalar_lea.vmem (!%p2125_p3), [#allocation7], %s2251_s8 }
  0x52   : > { %1919 = dma.done.wait (%p2178_p11), %s427_s6, 256  }
  0x53   : > { %1921 = vsyncadd (%p2178_p11), %s427_s6, 4294967040  ;;  %s436_s19 = sand.u32 1, %s2117_s24   ;;  %s438_s28 = sand.u32 1, %s1948_s14  }
  0x54   : > { %s2262_s30 = sshll.u32 %s438_s28, 3  ;;  %s437_s3 = scalar_lea.sflag [#allocation11], %s436_s19 }
  0x55   : > { %s440_s11 = scalar_lea.vmem [#allocation10], %s2262_s30 }
  0x56   : > { %1923 = dma.done.wait (%p2212_p6), %s437_s3, 128  }
  0x57   : > { %1925 = vsyncadd (%p2212_p6), %s437_s3, 4294967168  ;;  %p2527_p1 = scmp.eq.s32.totalorder %s2117_s24, 0 }
  0x59   : > { %1927 = dma.done.wait (%p2527_p1), [#allocation11], 2048   ;;  %p2528_p3 = pmov %p2527_p1 }
  0x5a   : > { %p2529_p9 = pmov %p2527_p1 }
  0x5b   : > { %1929 = vsyncadd (%p2528_p3), [#allocation11], 4294965248 }
  0x5c   : > { %1931 = dma.done.wait (%p2529_p9), [#allocation14], 4096   ;;  %p2530_p11 = pmov %p2527_p1 }
  0x5d   : > { %p2531_p2 = pmov %p2527_p1 }
  0x5e   : > { %1933 = vsyncadd (%p2530_p11), [#allocation14], 4294963200 }
  0x5f   : > { %1935 = dma.done.wait (%p2531_p2), [#allocation17], 2048   ;;  %p2532_p4 = pmov %p2527_p1 }
  0x60   : > { %s502_s9 = scalar_lea.vmem [#allocation18], %s2262_s30  ;;  %s2533_s25 = sld [smem:[#allocation26_spill]] }
  0x61   : > { %1937 = vsyncadd (%p2532_p4), [#allocation17], 4294965248 }
  0x66   : > { %p1405_p5 = scmp.ne.s32.totalorder %s2533_s25, 0 }
  0x67   : > { %s2534_s26 = sld [smem:[#allocation38_spill]] (!%p1405_p5)  ;;  %s1996_s20 = smov (!%p1405_p5), 32  }
  0x68   : > { %506 = sbr.rel (%p1405_p5) target bundleno = 410 (0x19a), region = 88  ;;  %s2535_s5 = sld [smem:[#allocation39_spill]] (!%p1405_p5) }
  0x69   : > { %s1997_s29 = smov (!%p1405_p5), 64   ;;  %s1998_s10 = smov (!%p1405_p5), 96  }
  0x6d   : > { %v524_v0 = vld [vmem:[#allocation13 + $0x78] sm:$0xff]  ;;  %v523_v1 = vld [vmem:[#allocation13 + $0x70] sm:$0xff]  ;;  %v522_v3 = vld [vmem:[#allocation13 + $0x68] sm:$0xff]  ;;  %vm615_vm0 = vcmask 261120  }
  0x6e   : > { %529 = vmatpush.msra.mxu0 %v524_v0  ;;  %1429 = vmatpush.msra.mxu2 %v524_v0  ;;  %v567_v2 = vld [vmem:[#allocation15 + $0x78] sm:$0xff]  ;;  %v566_v4 = vld [vmem:[#allocation15 + $0x70] sm:$0xff]  ;;  %v565_v5 = vld [vmem:[#allocation15 + $0x68] sm:$0xff] }
  0x6f   : > { %572 = vmatpush.msra.mxu1 %v567_v2  ;;  %1445 = vmatpush.msra.mxu3 %v567_v2  ;;  %v521_v6 = vld [vmem:[#allocation13 + $0x60] sm:$0xff]  ;;  %v520_v8 = vld [vmem:[#allocation13 + $0x58] sm:$0xff]  ;;  %v519_v10 = vld [vmem:[#allocation13 + $0x50] sm:$0xff] }
  0x70   : > { %530 = vmatpush.msra.mxu0 %v523_v1  ;;  %1430 = vmatpush.msra.mxu2 %v523_v1  ;;  %v564_v7 = vld [vmem:[#allocation15 + $0x60] sm:$0xff]  ;;  %v563_v9 = vld [vmem:[#allocation15 + $0x58] sm:$0xff]  ;;  %v562_v11 = vld [vmem:[#allocation15 + $0x50] sm:$0xff] }
  0x71   : > { %573 = vmatpush.msra.mxu1 %v566_v4  ;;  %1446 = vmatpush.msra.mxu3 %v566_v4  ;;  %v518_v12 = vld [vmem:[#allocation13 + $0x48] sm:$0xff]  ;;  %v517_v14 = vld [vmem:[#allocation13 + $0x40] sm:$0xff]  ;;  %v516_v16 = vld [vmem:[#allocation13 + $0x38] sm:$0xff] }
  0x72   : > { %531 = vmatpush.msra.mxu0 %v522_v3  ;;  %1431 = vmatpush.msra.mxu2 %v522_v3  ;;  %v561_v13 = vld [vmem:[#allocation15 + $0x48] sm:$0xff]  ;;  %v560_v15 = vld [vmem:[#allocation15 + $0x40] sm:$0xff]  ;;  %v559_v17 = vld [vmem:[#allocation15 + $0x38] sm:$0xff] }
  0x73   : > { %574 = vmatpush.msra.mxu1 %v565_v5  ;;  %1447 = vmatpush.msra.mxu3 %v565_v5  ;;  %v515_v18 = vld [vmem:[#allocation13 + $0x30] sm:$0xff]  ;;  %v514_v20 = vld [vmem:[#allocation13 + $0x28] sm:$0xff]  ;;  %v513_v22 = vld [vmem:[#allocation13 + $0x20] sm:$0xff] }
  0x74   : > { %532 = vmatpush.msra.mxu0 %v521_v6  ;;  %1432 = vmatpush.msra.mxu2 %v521_v6  ;;  %v558_v19 = vld [vmem:[#allocation15 + $0x30] sm:$0xff]  ;;  %v557_v21 = vld [vmem:[#allocation15 + $0x28] sm:$0xff]  ;;  %v556_v23 = vld [vmem:[#allocation15 + $0x20] sm:$0xff] }
  0x75   : > { %575 = vmatpush.msra.mxu1 %v564_v7  ;;  %1448 = vmatpush.msra.mxu3 %v564_v7  ;;  %v512_v24 = vld [vmem:[#allocation13 + $0x18] sm:$0xff]  ;;  %v511_v26 = vld [vmem:[#allocation13 + $0x10] sm:$0xff]  ;;  %v510_v28 = vld [vmem:[#allocation13 + $0x8] sm:$0xff] }
  0x76   : > { %533 = vmatpush.msra.mxu0 %v520_v8  ;;  %1433 = vmatpush.msra.mxu2 %v520_v8  ;;  %v555_v25 = vld [vmem:[#allocation15 + $0x18] sm:$0xff]  ;;  %v554_v27 = vld [vmem:[#allocation15 + $0x10] sm:$0xff]  ;;  %v553_v29 = vld [vmem:[#allocation15 + $0x8] sm:$0xff] }
  0x77   : > { %576 = vmatpush.msra.mxu1 %v563_v9  ;;  %1449 = vmatpush.msra.mxu3 %v563_v9  ;;  %v509_v30 = vld [vmem:[#allocation13] sm:$0xff]  ;;  %v508_v32 = vld [vmem:[%s430_s7 + $0x8] sm:$0xff]  ;;  %v1629_v34 = vld [vmem:[%s2534_s26] ss:$0 sm:$0xff] }
  0x78   : > { %534 = vmatpush.msra.mxu0 %v519_v10  ;;  %1434 = vmatpush.msra.mxu2 %v519_v10  ;;  %v507_v31 = vld [vmem:[%s430_s7] sm:$0xff] }
  0x79   : > { %577 = vmatpush.msra.mxu1 %v562_v11  ;;  %1450 = vmatpush.msra.mxu3 %v562_v11  ;;  %v552_v33 = vld [vmem:[#allocation15] sm:$0xff]  ;;  %v1630_v35 = vld [vmem:[%s2535_s5] ss:$0 sm:$0xff] }
  0x7a   : > { %535 = vmatpush.msra.mxu0 %v518_v12  ;;  %1435 = vmatpush.msra.mxu2 %v518_v12 }
  0x7b   : > { %578 = vmatpush.msra.mxu1 %v561_v13  ;;  %1451 = vmatpush.msra.mxu3 %v561_v13 }
  0x7c   : > { %536 = vmatpush.msra.mxu0 %v517_v14  ;;  %1436 = vmatpush.msra.mxu2 %v517_v14 }
  0x7d   : > { %579 = vmatpush.msra.mxu1 %v560_v15  ;;  %1452 = vmatpush.msra.mxu3 %v560_v15 }
  0x7e   : > { %537 = vmatpush.msra.mxu0 %v516_v16  ;;  %1437 = vmatpush.msra.mxu2 %v516_v16 }
  0x7f   : > { %580 = vmatpush.msra.mxu1 %v559_v17  ;;  %1453 = vmatpush.msra.mxu3 %v559_v17 }
  0x80   : > { %538 = vmatpush.msra.mxu0 %v515_v18  ;;  %1438 = vmatpush.msra.mxu2 %v515_v18 }
  0x81   : > { %581 = vmatpush.msra.mxu1 %v558_v19  ;;  %1454 = vmatpush.msra.mxu3 %v558_v19 }
  0x82   : > { %539 = vmatpush.msra.mxu0 %v514_v20  ;;  %1439 = vmatpush.msra.mxu2 %v514_v20 }
  0x83   : > { %582 = vmatpush.msra.mxu1 %v557_v21  ;;  %1455 = vmatpush.msra.mxu3 %v557_v21 }
  0x84   : > { %540 = vmatpush.msra.mxu0 %v513_v22  ;;  %1440 = vmatpush.msra.mxu2 %v513_v22 }
  0x85   : > { %583 = vmatpush.msra.mxu1 %v556_v23  ;;  %1456 = vmatpush.msra.mxu3 %v556_v23 }
  0x86   : > { %541 = vmatpush.msra.mxu0 %v512_v24  ;;  %1441 = vmatpush.msra.mxu2 %v512_v24 }
  0x87   : > { %584 = vmatpush.msra.mxu1 %v555_v25  ;;  %1457 = vmatpush.msra.mxu3 %v555_v25 }
  0x88   : > { %542 = vmatpush.msra.mxu0 %v511_v26  ;;  %1442 = vmatpush.msra.mxu2 %v511_v26 }
  0x89   : > { %585 = vmatpush.msra.mxu1 %v554_v27  ;;  %1458 = vmatpush.msra.mxu3 %v554_v27 }
  0x8a   : > { %543 = vmatpush.msra.mxu0 %v510_v28  ;;  %1443 = vmatpush.msra.mxu2 %v510_v28 }
  0x8b   : > { %586 = vmatpush.msra.mxu1 %v553_v29  ;;  %1459 = vmatpush.msra.mxu3 %v553_v29 }
  0x8c   : > { %544 = vmatpush.msra.mxu0 %v509_v30  ;;  %1444 = vmatpush.msra.mxu2 %v509_v30 }
  0x8d   : > { %545 = vmatmul.f32.vlgmr.msra.gmra.mxu0 %v507_v31  ;;  %548 = vmatmul.f32.vlgmr.msra.gmra.mxu2 %v508_v32 }
  0x8e   : > { %587 = vmatpush.msra.mxu1 %v552_v33  ;;  %1460 = vmatpush.msra.mxu3 %v552_v33 }
  0x8f   : > { %588 = vmatmul.f32.vlgmr.msra.gmra.mxu1 %v507_v31  ;;  %591 = vmatmul.f32.vlgmr.msra.gmra.mxu3 %v508_v32 }
 0x10a   : > { %v546_v36 = vpop.f32.mrf.mxu0 }
 0x10b   : > { %v547_v37 = vadd.f32 %v1629_v34, %v546_v36 }
 0x10c   : > { %v589_v38 = vpop.f32.mrf.mxu1 }
 0x10d   : > { %616 = vst.msk [vmem:[#allocation2] sm:$0xff] %vm615_vm0, %v547_v37  ;;  %609 = vrot.lane.b32.xlu2 %v547_v37, %s1996_s20  ;;  %603 = vrot.lane.b32.xlu1 %v547_v37, %s1997_s29  ;;  %v590_v39 = vadd.f32 %v1630_v35, %v589_v38 }
 0x10e   : > { %597 = vrot.lane.b32.xlu0 %v547_v37, %s1998_s10 }
 0x10f   : > { %644 = vst.msk [vmem:[#allocation3] sm:$0xff] %vm615_vm0, %v590_v39 }
 0x110   : > { %v549_v40 = vpop.f32.mrf.mxu2 }
 0x111   : > { %v550_v41 = vadd.f32 %v1629_v34, %v549_v40 }
 0x112   : > { %v592_v42 = vpop.f32.mrf.mxu3 }
 0x113   : > { %617 = vst.msk [vmem:[#allocation2 + $0x8] sm:$0xff] %vm615_vm0, %v550_v41  ;;  %v593_v43 = vadd.f32 %v1630_v35, %v592_v42 }
 0x115   : > { %632 = vrot.lane.b32.xlu2 %v590_v39, %s1997_s29  ;;  %605 = vrot.lane.b32.xlu1 %v550_v41, %s1997_s29  ;;  %645 = vst.msk [vmem:[#allocation3 + $0x8] sm:$0xff] %vm615_vm0, %v593_v43 }
 0x116   : > { %626 = vrot.lane.b32.xlu0 %v590_v39, %s1998_s10 }
 0x11d   : > { %611 = vrot.lane.b32.xlu2 %v550_v41, %s1996_s20  ;;  %628 = vrot.lane.b32.xlu1 %v593_v43, %s1998_s10 }
 0x11e   : > { %599 = vrot.lane.b32.xlu0 %v550_v41, %s1998_s10 }
 0x125   : > { %640 = vrot.lane.b32.xlu2 %v593_v43, %s1996_s20  ;;  %638 = vrot.lane.b32.xlu1 %v590_v39, %s1996_s20 }
 0x126   : > { %634 = vrot.lane.b32.xlu0 %v593_v43, %s1997_s29 }
 0x167   : > { %v610_v44 = vpop.permute.xlu2 %609 }
 0x168   : > { %622 = vst.msk [vmem:[#allocation2 + $0x30] sm:$0xff] %vm615_vm0, %v610_v44 }
 0x16f   : > { %v633_v45 = vpop.permute.xlu2 %632 }
 0x170   : > { %648 = vst.msk [vmem:[#allocation3 + $0x20] sm:$0xff] %vm615_vm0, %v633_v45 }
 0x177   : > { %v612_v46 = vpop.permute.xlu2 %611 }
 0x178   : > { %623 = vst.msk [vmem:[#allocation2 + $0x38] sm:$0xff] %vm615_vm0, %v612_v46 }
 0x17f   : > { %v641_v47 = vpop.permute.xlu2 %640  ;;  %v604_v48 = vpop.permute.xlu1 %603 }
 0x180   : > { %651 = vst.msk [vmem:[#allocation3 + $0x38] sm:$0xff] %vm615_vm0, %v641_v47  ;;  %v598_v49 = vpop.permute.xlu0 %597 }
 0x181   : > { %620 = vst.msk [vmem:[#allocation2 + $0x20] sm:$0xff] %vm615_vm0, %v604_v48 }
 0x182   : > { %618 = vst.msk [vmem:[#allocation2 + $0x10] sm:$0xff] %vm615_vm0, %v598_v49 }
 0x187   : > { %v606_v50 = vpop.permute.xlu1 %605 }
 0x188   : > { %621 = vst.msk [vmem:[#allocation2 + $0x28] sm:$0xff] %vm615_vm0, %v606_v50  ;;  %v627_v51 = vpop.permute.xlu0 %626 }
 0x189   : > { %646 = vst.msk [vmem:[#allocation3 + $0x10] sm:$0xff] %vm615_vm0, %v627_v51 }
 0x18f   : > { %v629_v52 = vpop.permute.xlu1 %628 }
 0x190   : > { %647 = vst.msk [vmem:[#allocation3 + $0x18] sm:$0xff] %vm615_vm0, %v629_v52  ;;  %v600_v53 = vpop.permute.xlu0 %599 }
 0x191   : > { %619 = vst.msk [vmem:[#allocation2 + $0x18] sm:$0xff] %vm615_vm0, %v600_v53 }
 0x197   : > { %v639_v54 = vpop.permute.xlu1 %638 }
 0x198   : > { %650 = vst.msk [vmem:[#allocation3 + $0x30] sm:$0xff] %vm615_vm0, %v639_v54  ;;  %v635_v55 = vpop.permute.xlu0 %634 }
 0x199   : > { %649 = vst.msk [vmem:[#allocation3 + $0x28] sm:$0xff] %vm615_vm0, %v635_v55 }
 0x19a PF: > { %v668_v56 = vld [vmem:[#allocation12 + $0x78] sm:$0xff]  ;;  %v667_v57 = vld [vmem:[#allocation12 + $0x70] sm:$0xff]  ;;  %v666_v58 = vld [vmem:[#allocation12 + $0x68] sm:$0xff]  ;;  %s2536_s6 = sld [smem:[#allocation37_spill]]  ;;  %s1999_s7 = smov 32   ;;  %vm701_vm1 = vcmask 7168  }
 0x19b   : > { %673 = vmatpush.msra.mxu0 %v668_v56  ;;  %v665_v59 = vld [vmem:[#allocation12 + $0x60] sm:$0xff]  ;;  %v664_v60 = vld [vmem:[#allocation12 + $0x58] sm:$0xff]  ;;  %v663_v61 = vld [vmem:[#allocation12 + $0x50] sm:$0xff]  ;;  %s2000_s13 = smov 96   ;;  %s2001_s19 = smov 64   ;;  %v2002_v13 = vmov -inf  }
 0x19c   : > { %v662_v62 = vld [vmem:[#allocation12 + $0x48] sm:$0xff]  ;;  %v661_v63 = vld [vmem:[#allocation12 + $0x40] sm:$0xff]  ;;  %v660_v0 = vld [vmem:[#allocation12 + $0x38] sm:$0xff]  ;;  %702 = vst.msk [vmem:[#allocation4] sm:$0xff] %vm701_vm1, %v2002_v13  ;;  %v2003_v14 = vmov 0.0   ;;  %vm710_vm2 = vcmask 261120  }
 0x19d   : > { %674 = vmatpush.msra.mxu0 %v667_v57  ;;  %v659_v1 = vld [vmem:[#allocation12 + $0x30] sm:$0xff]  ;;  %v658_v2 = vld [vmem:[#allocation12 + $0x28] sm:$0xff]  ;;  %v657_v3 = vld [vmem:[#allocation12 + $0x20] sm:$0xff]  ;;  %703 = vst.msk [vmem:[#allocation4 + $0x8] sm:$0xff] %vm701_vm1, %v2002_v13  ;;  %s2337_s3 = smov 0  }
 0x19e   : > { %v656_v4 = vld [vmem:[#allocation12 + $0x18] sm:$0xff]  ;;  %v655_v5 = vld [vmem:[#allocation12 + $0x10] sm:$0xff]  ;;  %v654_v6 = vld [vmem:[#allocation12 + $0x8] sm:$0xff]  ;;  %704 = vst.msk [vmem:[#allocation4 + $0x10] sm:$0xff] %vm701_vm1, %v2002_v13 }
 0x19f   : > { %675 = vmatpush.msra.mxu0 %v666_v58  ;;  %v653_v7 = vld [vmem:[#allocation12] sm:$0xff]  ;;  %v652_v8 = vld [vmem:[%s440_s11] sm:$0xff]  ;;  %705 = vst.msk [vmem:[#allocation4 + $0x18] sm:$0xff] %vm701_vm1, %v2002_v13 }
 0x1a0   : > { %v1631_v9 = vld [vmem:[%s2536_s6] ss:$0 sm:$0xff]  ;;  %706 = vst.msk [vmem:[#allocation5] sm:$0xff] %vm701_vm1, %v2003_v14 }
 0x1a1   : > { %676 = vmatpush.msra.mxu0 %v665_v59  ;;  %707 = vst.msk [vmem:[#allocation5 + $0x8] sm:$0xff] %vm701_vm1, %v2003_v14 }
 0x1a2   : > { %708 = vst.msk [vmem:[#allocation5 + $0x10] sm:$0xff] %vm701_vm1, %v2003_v14 }
 0x1a3   : > { %677 = vmatpush.msra.mxu0 %v664_v60  ;;  %709 = vst.msk [vmem:[#allocation5 + $0x18] sm:$0xff] %vm701_vm1, %v2003_v14 }
 0x1a4   : > { %711 = vst.msk [vmem:[#allocation6] sm:$0xff] %vm710_vm2, %v2003_v14 }
 0x1a5   : > { %678 = vmatpush.msra.mxu0 %v663_v61  ;;  %712 = vst.msk [vmem:[#allocation6 + $0x8] sm:$0xff] %vm710_vm2, %v2003_v14 }
 0x1a6   : > { %713 = vst.msk [vmem:[#allocation6 + $0x10] sm:$0xff] %vm710_vm2, %v2003_v14 }
 0x1a7   : > { %679 = vmatpush.msra.mxu0 %v662_v62  ;;  %714 = vst.msk [vmem:[#allocation6 + $0x18] sm:$0xff] %vm710_vm2, %v2003_v14 }
 0x1a9   : > { %680 = vmatpush.msra.mxu0 %v661_v63 }
 0x1ab   : > { %681 = vmatpush.msra.mxu0 %v660_v0 }
 0x1ad   : > { %682 = vmatpush.msra.mxu0 %v659_v1 }
 0x1af   : > { %683 = vmatpush.msra.mxu0 %v658_v2 }
 0x1b1   : > { %684 = vmatpush.msra.mxu0 %v657_v3 }
 0x1b3   : > { %685 = vmatpush.msra.mxu0 %v656_v4 }
 0x1b5   : > { %686 = vmatpush.msra.mxu0 %v655_v5 }
 0x1b7   : > { %687 = vmatpush.msra.mxu0 %v654_v6 }
 0x1b9   : > { %688 = vmatpush.msra.mxu0 %v653_v7 }
 0x1ba   : > { %689 = vmatmul.f32.vlgmr.msra.gmra.mxu0 %v652_v8 }
 0x237   : > { %v690_v10 = vpop.f32.mrf.mxu0 }
 0x238   : > { %v691_v11 = vadd.f32 %v1631_v9, %v690_v10 }
 0x23a   : > { %v2314_v12 = vmul.f32 0.17677669, %v691_v11 }
 0x23c   : > { %699 = vrot.lane.b32.xlu1 %v2314_v12, %s1999_s7  ;;  %695 = vrot.lane.b32.xlu0 %v2314_v12, %s2000_s13 }
 0x244   : > { %697 = vrot.lane.b32.xlu0 %v2314_v12, %s2001_s19 }
 0x2ae   : > { %v2331_v15 = vpop.permute.xlu1 %699  ;;  %v2333_v16 = vpop.permute.xlu0 %695 }
 0x2b6   : > { %v2335_v17 = vpop.permute.xlu0 %697 }
 0x2b7 LB: >> { %s1406_s11 = sshll.u32 %s1988_s3, 3  ;;  %vm836_vm3 = vcmask 64512   ;;  %v2004_v30 = vmov 0   ;;  %v832_v31 = vld [vmem:[#allocation4] sm:$0xff]  ;;  %v834_v35 = vld [vmem:[#allocation4 + $0x10] sm:$0xff]  ;;  %v833_v37 = vld [vmem:[#allocation4 + $0x8] sm:$0xff]  ;;  %s1988_s3 = sphi %s2337_s3, %s720_s3  }
 0x2b8   : >> { %s722_s25 = scalar_lea.vmem [#allocation2], %s1406_s11  ;;  %1633 = vset.pattern.permute.xlu0 %v2004_v30  ;;  %1632 = vset.pattern.permute.xlu2 %v2004_v30  ;;  %v835_v45 = vld [vmem:[#allocation4 + $0x18] sm:$0xff]  ;;  %s727_s24 = scalar_lea.vmem [#allocation3], %s1406_s11 }
 0x2b9   : >> { %v723_v18 = vld [vmem:[%s722_s25] sm:$0xff]  ;;  %v724_v20 = vld [vmem:[%s722_s25 + $0x10] sm:$0xff]  ;;  %1634 = vset.pattern.permute.xlu1 %v2004_v30  ;;  %s720_s3 = sadd.s32 1, %s1988_s3  }
 0x2ba   : >> { %v725_v19 = vld [vmem:[%s722_s25 + $0x20] sm:$0xff]  ;;  %1407 = vmatpush.xpose.msk.msra.mxu0 %vm710_vm2, %v723_v18  ;;  %v726_v21 = vld [vmem:[%s722_s25 + $0x30] sm:$0xff]  ;;  %1409 = vmatpush.xpose.msk.msra.mxu1 %vm710_vm2, %v724_v20  ;;  %p717_p6 = scmp.ge.s32.totalorder %s720_s3, 2  }
 0x2bb   : >> { %1411 = vmatpush.xpose.msk.msra.mxu2 %vm710_vm2, %v725_v19  ;;  %1413 = vmatpush.xpose.msk.msra.mxu3 %vm710_vm2, %v726_v21  ;;  %v730_v55 = vld [vmem:[%s727_s24 + $0x20] sm:$0xff]  ;;  %v731_v56 = vld [vmem:[%s727_s24 + $0x30] sm:$0xff]  ;;  %s2537_s2 = sld [smem:[#allocation27_spill]] (%p717_p6)  ;;  %s1225_s19 = sshll.u32 (%p717_p6), %s502_s9, 4  ;;  %s1226_s19 = int_to_ptr.vmem [resolvable:$true] %s1225_s19 }
 0x2bc   : >> { %v728_v57 = vld [vmem:[%s727_s24] sm:$0xff]  ;;  %v729_v58 = vld [vmem:[%s727_s24 + $0x10] sm:$0xff]  ;;  %s2538_s26 = sld [smem:[#allocation26_spill]] (%p717_p6)  ;;  %s1211_s11 = scalar_lea.sflag (%p717_p6), [#allocation9], %s438_s28 }
 0x2bd   : >> { %1408 = vmatmul.msk.f32.vlgmr.msra.gmra.mxu0 %vm710_vm2, %v2314_v12  ;;  %1410 = vmatmul.msk.f32.vlgmr.msra.gmra.mxu1 %vm710_vm2, %v2333_v16  ;;  %s2539_s10 = sld [smem:[#allocation42_spill]] (%p717_p6) }
 0x2be   : >> { %1412 = vmatmul.msk.f32.vlgmr.msra.gmra.mxu2 %vm710_vm2, %v2335_v17  ;;  %1414 = vmatmul.msk.f32.vlgmr.msra.gmra.mxu3 %vm710_vm2, %v2331_v15  ;;  %v1094_v17 = vld [vmem:[#allocation16 + $0x8] sm:$0xff] (%p717_p6)  ;;  %s2541_s13 = sld [smem:[#allocation41_spill]] (%p717_p6) }
 0x2bf   : >> { %1017 = vmatpush.msrb.mxu2 %v730_v55  ;;  %1040 = vmatpush.msrb.mxu3 %v731_v56 }
 0x2c0   : >> { %971 = vmatpush.msrb.mxu0 %v728_v57  ;;  %994 = vmatpush.msrb.mxu1 %v729_v58  ;;  %v2005_v57 = vmov (%p717_p6), 0   ;;  %v1104_v58 = vld [vmem:[#allocation16 + $0x58] sm:$0xff] (%p717_p6) }
 0x2c1   : > { %1170 = vmatpush.msra.mxu2 (%p717_p6), %v1104_v58  ;;  %s1424_s16 = sshll.u32 (%p717_p6), %s2537_s2, 1 }
 0x2c2   : > { %s1221_s12 = sadd.s32 (%p717_p6), %s2538_s26, %s1424_s16 }
 0x2c3   : > { %s1425_s5 = sshll.u32 (%p717_p6), %s1221_s12, 3  ;;  %s1862_s16 = scalar_lea.hbm (%p717_p6), %s2539_s10, 32 }
 0x2c4   : > { %s1223_s4 = scalar_lea.hbm (%p717_p6), %s2539_s10, %s1425_s5 }
 0x2c5   : > { %s1227_s3 = sshll.u32 (%p717_p6), %s1223_s4, 4  ;;  %s1228_s3 = int_to_ptr.hbm [resolvable:$true] %s1227_s3 }
 0x2c6   : > { %s1856_s25 = sshra.s32 (%p717_p6), %s1228_s3, 4  ;;  %s1857_s25 = int_to_ptr.hbm [resolvable:$true] %s1856_s25 }
 0x2c7   : > { %s1858_s24 = scalar_lea.hbm (%p717_p6), %s1857_s25, 8  ;;  %p1863_p0 = scmp.lt.s32.totalorder (%p717_p6), %s1857_s25, %s2539_s10 }
 0x2c8   : > { %p1859_p8 = scmp.ne.s32.totalorder (%p717_p6), %s1857_s25, %s1858_s24  ;;  %p1864_p1 = scmp.lt.s32.totalorder (%p717_p6), %s1862_s16, %s1858_s24 }
 0x2ca   : > { %p1860_p10 = pnand (%p717_p6), %p1859_p8, %p2219_p12  ;;  %p1865_p3 = por (%p717_p6), %p1864_p1, %p1863_p0 }
 0x2cc   : > { %p1861_p13 = pneg (%p717_p6), %p1860_p10 }
 0x2ce   : > { %p1866_p9 = pnand (%p717_p6), %p1865_p3, %p1861_p13 }
 0x33a   : >> { %v2357_v22 = vpop.f32.mrf.mxu0  ;;  %v2361_v24 = vpop.f32.mrf.mxu1 }
 0x33b   : >> { %v837_v23 = vsel %vm836_vm3, %v2357_v22, -inf  ;;  %v840_v27 = vsel %vm836_vm3, %v2361_v24, -inf }
 0x33c   : >> { %838 = vmax.xlane.f32.xlu1 %v837_v23 }
 0x341   : >> { %v2363_v25 = vpop.f32.mrf.mxu2  ;;  %v2369_v28 = vpop.f32.mrf.mxu3 }
 0x342   : >> { %v843_v26 = vsel %vm836_vm3, %v2363_v25, -inf  ;;  %v846_v29 = vsel %vm836_vm3, %v2369_v28, -inf }
 0x343   : >> { %844 = vmax.xlane.f32.xlu0 %v843_v26 }
 0x344   : >> { %841 = vmax.xlane.f32.xlu1 %v840_v27  ;;  %v900_v27 = vld [vmem:[#allocation5 + $0x18] sm:$0xff] }
 0x34b   : >> { %847 = vmax.xlane.f32.xlu0 %v846_v29 }
 0x3af   : >> { %v839_v32 = vpop.xlane.xlu1 %838 }
 0x3b0   : >> { %v849_v33 = vmax.f32 %v832_v31, %v839_v32 }
 0x3b2   : >> { %1053 = vst.msk [vmem:[#allocation4] sm:$0xff] %vm701_vm1, %v849_v33  ;;  %867 = vperm.xlu0 %1633, %v849_v33   ;;  %v853_v34 = vsub.f32 %v832_v31, %v849_v33  ;;  %v927_v31 = vld [vmem:[#allocation6 + $0x10] sm:$0xff]  ;;  %v897_v33 = vld [vmem:[#allocation5] sm:$0xff] }
 0x3b4   : >> { %v857_v39 = vmul.f32 1.442695, %v853_v34 }
 0x3b6   : >> { %v845_v36 = vpop.xlane.xlu0 %844  ;;  %1635 = vpow2.f32 %v857_v39 }
 0x3b7   : >> { %v851_v38 = vmax.f32 %v834_v35, %v845_v36  ;;  %v842_v40 = vpop.xlane.xlu1 %841 }
 0x3b8   : >> { %v850_v42 = vmax.f32 %v833_v37, %v842_v40 }
 0x3b9   : >> { %v855_v41 = vsub.f32 %v834_v35, %v851_v38  ;;  %1055 = vst.msk [vmem:[#allocation4 + $0x10] sm:$0xff] %vm701_vm1, %v851_v38  ;;  %877 = vperm.xlu2 %1632, %v851_v38   ;;  %v928_v38 = vld [vmem:[#allocation6 + $0x18] sm:$0xff] }
 0x3ba   : >> { %1054 = vst.msk [vmem:[#allocation4 + $0x8] sm:$0xff] %vm701_vm1, %v850_v42  ;;  %872 = vperm.xlu1 %1634, %v850_v42   ;;  %v854_v44 = vsub.f32 %v833_v37, %v850_v42  ;;  %v925_v42 = vld [vmem:[#allocation6] sm:$0xff] }
 0x3bb   : >> { %v861_v43 = vmul.f32 1.442695, %v855_v41  ;;  %v898_v41 = vld [vmem:[#allocation5 + $0x8] sm:$0xff] }
 0x3bc   : >> { %v859_v48 = vmul.f32 1.442695, %v854_v44  ;;  %v2377_v49 = vpop.eup %1635 }
 0x3bd   : >> { %1637 = vpow2.f32 %v861_v43  ;;  %v901_v36 = vmul.f32 %v2377_v49, %v897_v33  ;;  %v1653_v33 = vld [vmem:[%s2541_s13] ss:$0 sm:$0xff] (%p717_p6) }
 0x3be   : >> { %v848_v46 = vpop.xlane.xlu0 %847  ;;  %1639 = vpow2.f32 %v859_v48 }
 0x3bf   : >> { %v852_v47 = vmax.f32 %v835_v45, %v848_v46 }
 0x3c1   : >> { %1056 = vst.msk [vmem:[#allocation4 + $0x18] sm:$0xff] %vm701_vm1, %v852_v47  ;;  %882 = vperm.xlu2 %1632, %v852_v47   ;;  %v856_v50 = vsub.f32 %v835_v45, %v852_v47 }
 0x3c2   : >> { %931 = vperm.xlu1 %1634, %v2377_v49  }
 0x3c3   : >> { %v1638_v51 = vpop.eup %1637  ;;  %v863_v52 = vmul.f32 1.442695, %v856_v50 }
 0x3c4   : >> { %941 = vperm.xlu0 %1633, %v1638_v51   ;;  %v2380_v53 = vpop.eup %1639 }
 0x3c5   : >> { %1641 = vpow2.f32 %v863_v52  ;;  %v902_v45 = vmul.f32 %v2380_v53, %v898_v41 }
 0x3ca   : >> { %936 = vperm.xlu1 %1634, %v2380_v53  }
 0x3cb   : >> { %v1642_v54 = vpop.eup %1641 }
 0x3cc   : > { %1651 = vset.pattern.permute.xlu0 (%p717_p6), %v2005_v57 }
 0x3d2   : >> { %946 = vperm.xlu1 %1634, %v1642_v54  }
 0x3da   : > { %1652 = vset.pattern.permute.xlu1 (%p717_p6), %v2005_v57 }
 0x413   : >> { %v878_v59 = vpop.permute.xlu2 %877 }
 0x414   : >> { %v887_v60 = vsub.f32 %v2363_v25, %v878_v59  ;;  %v1096_v59 = vld [vmem:[#allocation16 + $0x18] sm:$0xff] (%p717_p6) }
 0x415   : > { %1124 = vmatpush.msra.mxu0 (%p717_p6), %v1096_v59 }
 0x416   : >> { %v893_v61 = vmul.f32 1.442695, %v887_v60  ;;  %v1103_v60 = vld [vmem:[#allocation16 + $0x50] sm:$0xff] (%p717_p6) }
 0x417   : > { %1171 = vmatpush.msra.mxu2 (%p717_p6), %v1103_v60 }
 0x418   : >> { %1643 = vpow2.f32 %v893_v61  ;;  %v1095_v61 = vld [vmem:[#allocation16 + $0x10] sm:$0xff] (%p717_p6) }
 0x419   : > { %1125 = vmatpush.msra.mxu0 (%p717_p6), %v1095_v61 }
 0x41b   : >> { %v883_v62 = vpop.permute.xlu2 %882  ;;  %1126 = vmatpush.msra.mxu0 (%p717_p6), %v1094_v17 }
 0x41c   : >> { %v888_v63 = vsub.f32 %v2369_v28, %v883_v62  ;;  %v904_v28 = vmul.f32 %v1642_v54, %v900_v27  ;;  %v1102_v62 = vld [vmem:[#allocation16 + $0x48] sm:$0xff] (%p717_p6) }
 0x41d   : > { %1172 = vmatpush.msra.mxu2 (%p717_p6), %v1102_v62 }
 0x41e   : >> { %v1644_v0 = vpop.eup %1643  ;;  %v895_v1 = vmul.f32 1.442695, %v888_v63 }
 0x41f   : >> { %1417 = vmatmul.msk.f32.vlgmr.msrb.gmra.mxu2 %vm836_vm3, %v1644_v0  ;;  %v911_v2 = vsel %vm836_vm3, %v1644_v0, 0.0 }
 0x420   : >> { %1645 = vpow2.f32 %v895_v1  ;;  %912 = vadd.xlane.f32.xlu0 %v911_v2  ;;  %v1101_v2 = vld [vmem:[#allocation16 + $0x40] sm:$0xff] (%p717_p6) }
 0x421   : > { %1173 = vmatpush.msra.mxu2 (%p717_p6), %v1101_v2 }
 0x424   : >> { %v868_v3 = vpop.permute.xlu0 %867 }
 0x425   : >> { %v885_v5 = vsub.f32 %v2357_v22, %v868_v3  ;;  %v899_v22 = vld [vmem:[#allocation5 + $0x10] sm:$0xff] }
 0x426   : >> { %v1646_v4 = vpop.eup %1645  ;;  %v903_v23 = vmul.f32 %v1638_v51, %v899_v22  ;;  %v926_v51 = vld [vmem:[#allocation6 + $0x8] sm:$0xff]  ;;  %v1093_v3 = vld [vmem:[#allocation16] sm:$0xff] (%p717_p6) }
 0x427   : >> { %1418 = vmatmul.msk.f32.vlgmr.msrb.gmra.mxu3 %vm836_vm3, %v1646_v4  ;;  %v914_v6 = vsel %vm836_vm3, %v1646_v4, 0.0  ;;  %v889_v7 = vmul.f32 1.442695, %v885_v5  ;;  %v1100_v4 = vld [vmem:[#allocation16 + $0x38] sm:$0xff] (%p717_p6)  ;;  %1127 = vmatpush.msra.mxu0 (%p717_p6), %v1093_v3 }
 0x428   : >> { %915 = vadd.xlane.f32.xlu1 %v914_v6  ;;  %v1108_v5 = vld [vmem:[#allocation16 + $0x78] sm:$0xff] (%p717_p6)  ;;  %1147 = vmatpush.msra.mxu1 (%p717_p6), %v1100_v4  ;;  %v1099_v6 = vld [vmem:[#allocation16 + $0x30] sm:$0xff] (%p717_p6) }
 0x429   : >> { %1647 = vpow2.f32 %v889_v7  ;;  %1193 = vmatpush.msra.mxu3 (%p717_p6), %v1108_v5  ;;  %v1107_v7 = vld [vmem:[#allocation16 + $0x70] sm:$0xff] (%p717_p6) }
 0x42a   : > { %1148 = vmatpush.msra.mxu1 (%p717_p6), %v1099_v6 }
 0x42b   : > { %1194 = vmatpush.msra.mxu3 (%p717_p6), %v1107_v7 }
 0x42c   : >> { %v873_v8 = vpop.permute.xlu1 %872 }
 0x42d   : >> { %v886_v9 = vsub.f32 %v2361_v24, %v873_v8  ;;  %v1098_v8 = vld [vmem:[#allocation16 + $0x28] sm:$0xff] (%p717_p6) }
 0x42e   : > { %1149 = vmatpush.msra.mxu1 (%p717_p6), %v1098_v8 }
 0x42f   : >> { %v1648_v10 = vpop.eup %1647  ;;  %v891_v11 = vmul.f32 1.442695, %v886_v9  ;;  %v1106_v9 = vld [vmem:[#allocation16 + $0x68] sm:$0xff] (%p717_p6) }
 0x430   : >> { %1415 = vmatmul.msk.f32.vlgmr.msrb.gmra.mxu0 %vm836_vm3, %v1648_v10  ;;  %v905_v13 = vsel %vm836_vm3, %v1648_v10, 0.0  ;;  %1195 = vmatpush.msra.mxu3 (%p717_p6), %v1106_v9  ;;  %v1097_v10 = vld [vmem:[#allocation16 + $0x20] sm:$0xff] (%p717_p6) }
 0x431   : >> { %1649 = vpow2.f32 %v891_v11  ;;  %906 = vadd.xlane.f32.xlu2 %v905_v13  ;;  %v1105_v11 = vld [vmem:[#allocation16 + $0x60] sm:$0xff] (%p717_p6)  ;;  %1150 = vmatpush.msra.mxu1 (%p717_p6), %v1097_v10 }
 0x432   : > { %1196 = vmatpush.msra.mxu3 (%p717_p6), %v1105_v11 }
 0x434   : >> { %v932_v19 = vpop.permute.xlu1 %931 }
 0x435   : >> { %v949_v46 = vmul.f32 %v932_v19, %v925_v42 }
 0x436   : >> { %v942_v21 = vpop.permute.xlu0 %941 }
 0x437   : >> { %v1650_v14 = vpop.eup %1649  ;;  %v951_v32 = vmul.f32 %v942_v21, %v927_v31 }
 0x438   : >> { %1416 = vmatmul.msk.f32.vlgmr.msrb.gmra.mxu1 %vm836_vm3, %v1650_v14  ;;  %v908_v18 = vsel %vm836_vm3, %v1650_v14, 0.0 }
 0x439   : >> { %909 = vadd.xlane.f32.xlu2 %v908_v18 }
 0x43c   : >> { %v937_v20 = vpop.permute.xlu1 %936 }
 0x43d   : >> { %v950_v52 = vmul.f32 %v937_v20, %v926_v51 }
 0x444   : >> { %v947_v24 = vpop.permute.xlu1 %946 }
 0x445   : >> { %v952_v40 = vmul.f32 %v947_v24, %v928_v38 }
 0x493   : >> { %v913_v25 = vpop.xlane.xlu0 %912 }
 0x494   : >> { %v919_v26 = vadd.f32 %v913_v25, %v903_v23 }
 0x496   : >> { %923 = vst.msk [vmem:[#allocation5 + $0x10] sm:$0xff] %vm701_vm1, %v919_v26 }
 0x49b   : >> { %v916_v29 = vpop.xlane.xlu1 %915 }
 0x49c   : >> { %v920_v30 = vadd.f32 %v916_v29, %v904_v28 }
 0x49d   : > { %v1063_v53 = vld [vmem:[#allocation5 + $0x10] sm:$0xff] (%p717_p6) }
 0x49e   : >> { %924 = vst.msk [vmem:[#allocation5 + $0x18] sm:$0xff] %vm701_vm1, %v920_v30  ;;  %1654 = vrcp.f32 (%p717_p6), %v1063_v53 }
 0x4a2   : >> { %v1019_v34 = vpop.f32.mrf.mxu2 }
 0x4a3   : >> { %v1047_v35 = vadd.f32 %v1019_v34, %v951_v32 }
 0x4a4   : >> { %v907_v37 = vpop.xlane.xlu2 %906  ;;  %v1655_v1 = vpop.eup (%p717_p6), %1654 }
 0x4a5   : >> { %1051 = vst.msk [vmem:[#allocation6 + $0x10] sm:$0xff] %vm710_vm2, %v1047_v35  ;;  %v917_v39 = vadd.f32 %v907_v37, %v901_v36  ;;  %v1064_v63 = vld [vmem:[#allocation5 + $0x18] sm:$0xff] (%p717_p6)  ;;  %1081 = vperm.xlu0 (%p717_p6), %1651, %v1655_v1  }
 0x4a7   : >> { %921 = vst.msk [vmem:[#allocation5] sm:$0xff] %vm701_vm1, %v917_v39 }
 0x4aa   : >> { %v1042_v43 = vpop.f32.mrf.mxu3 }
 0x4ab   : >> { %v1048_v44 = vadd.f32 %v1042_v43, %v952_v40 }
 0x4ac   : >> { %v910_v47 = vpop.xlane.xlu2 %909  ;;  %v1059_v13 = vld [vmem:[#allocation6 + $0x10] sm:$0xff] (%p717_p6) }
 0x4ad   : >> { %1052 = vst.msk [vmem:[#allocation6 + $0x18] sm:$0xff] %vm710_vm2, %v1048_v44  ;;  %v918_v48 = vadd.f32 %v910_v47, %v902_v45  ;;  %v973_v49 = vpop.f32.mrf.mxu0 }
 0x4ae   : >> { %v1045_v50 = vadd.f32 %v973_v49, %v949_v46  ;;  %v1061_v56 = vld [vmem:[#allocation5] sm:$0xff] (%p717_p6) }
 0x4af   : >> { %922 = vst.msk [vmem:[#allocation5 + $0x8] sm:$0xff] %vm701_vm1, %v918_v48  ;;  %1656 = vrcp.f32 (%p717_p6), %v1061_v56 }
 0x4b0   : >> { %1049 = vst.msk [vmem:[#allocation6] sm:$0xff] %vm710_vm2, %v1045_v50  ;;  %1658 = vrcp.f32 (%p717_p6), %v1064_v63 }
 0x4b4   : > { %719 = sbr.rel (!%p717_p6) target bundleno = 695 (0x2b7), region = 147  ;;  %v1060_v22 = vld [vmem:[#allocation6 + $0x18] sm:$0xff] (%p717_p6) }
 0x4b5   : >> { %v996_v54 = vpop.f32.mrf.mxu1  ;;  %v1657_v12 = vpop.eup (%p717_p6), %1656 }
 0x4b6   : >> { %v1046_v55 = vadd.f32 %v996_v54, %v950_v52  ;;  %v1062_v0 = vld [vmem:[#allocation5 + $0x8] sm:$0xff] (%p717_p6)  ;;  %1071 = vperm.xlu1 (%p717_p6), %1652, %v1657_v12   ;;  %v1659_v15 = vpop.eup (%p717_p6), %1658 }
 0x4b7   : > { %1660 = vrcp.f32 (%p717_p6), %v1062_v0  ;;  %1086 = vperm.xlu0 (%p717_p6), %1651, %v1659_v15   ;;  %v1057_v14 = vld [vmem:[#allocation6] sm:$0xff] (%p717_p6) }
 0x4b8   : >> { %1050 = vst.msk [vmem:[#allocation6 + $0x8] sm:$0xff] %vm710_vm2, %v1046_v55 }
 0x4bd   : > { %v1661_v16 = vpop.eup %1660 }
 0x4be   : > { %1076 = vperm.xlu1 %1652, %v1661_v16  }
 0x4bf   : > { %v1058_v23 = vld [vmem:[#allocation6 + $0x8] sm:$0xff] }
 0x517   : > { %v1082_v18 = vpop.permute.xlu0 %1081 }
 0x518   : > { %v1091_v19 = vmul.f32 %v1082_v18, %v1059_v13 }
 0x51a   : > { %1421 = vmatmul.msk.f32.vlgmr.msra.gmra.mxu2 %vm710_vm2, %v1091_v19 }
 0x528   : > { %v1072_v20 = vpop.permute.xlu1 %1071 }
 0x529   : > { %v1089_v21 = vmul.f32 %v1072_v20, %v1057_v14  ;;  %v1087_v24 = vpop.permute.xlu0 %1086 }
 0x52a   : > { %v1092_v25 = vmul.f32 %v1087_v24, %v1060_v22 }
 0x52b   : > { %1419 = vmatmul.msk.f32.vlgmr.msra.gmra.mxu0 %vm710_vm2, %v1089_v21 }
 0x52c   : > { %1422 = vmatmul.msk.f32.vlgmr.msra.gmra.mxu3 %vm710_vm2, %v1092_v25 }
 0x530   : > { %v1077_v26 = vpop.permute.xlu1 %1076 }
 0x531   : > { %v1090_v27 = vmul.f32 %v1077_v26, %v1058_v23 }
 0x533   : > { %1420 = vmatmul.msk.f32.vlgmr.msra.gmra.mxu1 %vm710_vm2, %v1090_v27 }
 0x59d   : > { %v1175_v31 = vpop.f32.mrf.mxu2 }
 0x5a8   : > { %v1129_v28 = vpop.f32.mrf.mxu0 }
 0x5af   : > { %v1198_v34 = vpop.f32.mrf.mxu3 }
 0x5b0   : > { %v1152_v29 = vpop.f32.mrf.mxu1 }
 0x5b1   : > { %v1201_v30 = vadd.f32 %v1152_v29, %v1129_v28 }
 0x5b3   : > { %v1202_v32 = vadd.f32 %v1201_v30, %v1175_v31 }
 0x5b5   : > { %v1203_v35 = vadd.f32 %v1202_v32, %v1198_v34 }
 0x5b7   : > { %v1208_v36 = vadd.f32 %v1653_v33, %v1203_v35 }
 0x5b9   : > { %1209 = vst [vmem:[%s502_s9] sm:$0xff] %v1208_v36 }
 0x5ba   : > { %1869 = shalt.err (!%p1866_p9)
}
 0x5bb   : > { %1481 = dma.vmem_to_hbm [thread:$0]  (%p2219_p12), %s1226_s19, 128, %s1228_s3, %s1211_s11  }
 0x5bc PF: > { %s2542_s28 = sld [smem:[#allocation25_spill]]  ;;  %p1516_p11 = scmp.ge.s32.totalorder %s1984_s23, 2 }
 0x5be   : > { %p1504_p2 = pnand %p1516_p11, %p2223_p7 }
 0x5c0   : > { %p1505_p4 = pneg %p1504_p2 }
 0x5c2   : > { %s1239_s9 = sand.u32 1, %s2542_s28  }
 0x5c3   : > { %s1240_s20 = scalar_lea.sflag [#allocation9], %s1239_s9 }
 0x5c4   : > { %1939 = dma.done.wait (%p1505_p4), %s1240_s20, 128  }
 0x5c5   : > { %1941 = vsyncadd (%p1505_p4), %s1240_s20, 4294967168  ;;  %s31_s23 = sadd.s32 1, %s1984_s23   ;;  %s2544_s29 = sld [smem:[#allocation28_spill]] }
 0x5c6   : > { %p28_p5 = scmp.ge.s32.totalorder %s31_s23, 6   ;;  %s2545_s4 = sld [smem:[#allocation30_spill]] }
 0x5c7   : > { %s2546_s13 = smov %s1948_s14  ;;  %s2547_s14 = smov %s1952_s15 }
 0x5c8   : > { %s2548_s15 = smov %s2236_s0  ;;  %s2549_s16 = smov %s1960_s17 }
 0x5c9   : > { %s2550_s17 = smov %s1964_s18  ;;  %s2551_s18 = smov %s2233_s27 }
 0x5ca   : > { %s2552_s19 = smov %s1976_s21  ;;  %s2553_s20 = smov %s1980_s22 }
 0x5cb   : > { %s2554_s21 = smov %s2544_s29  ;;  %30 = sbr.rel (!%p28_p5) target bundleno = 24 (0x18), region = 158 }
 0x5cc   : > { %s2555_s22 = smov %s2545_s4 }
 0x5d0   :  { %1246 = vsyncpa [#allocation8], 1 }
 0x5d1   :  { %1248 = vsyncpa [#allocation8 + $0x1], 1 }
 0x5d2   :  { %1249 = vsyncpa [#allocation11], 1 }
 0x5d3   :  { %1251 = vsyncpa [#allocation11 + $0x1], 1 }
 0x5d4   :  { %1252 = vsyncpa [#allocation14], 1 }
 0x5d5   :  { %1253 = vsyncpa [#allocation17], 1 }
 0x5d6   :  { %1254 = vsyncpa [#allocation9], 1 }
 0x5d7   :  { %1256 = vsyncpa [#allocation9 + $0x1], 1 }

</bundles_post_ra>
